<compile_context>
chip_gen: v5e
topology: v5e:2x2
jax: 0.10.0
libtpu: 0.0.40
codegen_flags: <defaults>
</compile_context>

<pallas_src>
import jax
import jax.numpy as jnp
from jax.experimental import pallas as pl
from jax.experimental.pallas import tpu as pltpu

LANE = 128  # lane width: pad all last dims (and the node axis) to multiples of this


def _ceil_to(n, m):
    return ((n + m - 1) // m) * m


# ----------------------------------------------------------------------------
# Fused kernel: all GRGC layers + sum readout, single invocation, no scratch
# ----------------------------------------------------------------------------
def _make_fused_kernel(num_layers, num_relation, n_pad, num_valid_nodes):
    R = num_relation

    def kernel(*refs):
        adj_ref = refs[0]                           # (R*Np, Np)        bf16
        x_ref = refs[1]                             # (Np, Dp0)         bf16
        wb_refs = refs[2:2 + 2 * num_layers]        # per layer: W_cat bf16, b f32
        node_ref = refs[2 + 2 * num_layers]         # (Np, DpL)         f32
        graph_ref = refs[3 + 2 * num_layers]        # (1, DpL)          f32

        adj = adj_ref[...]                          # stacked relational adjacency
        h = x_ref[...]                              # bf16 layer input
        hf = None

        for l in range(num_layers):                 # static trip count -> unrolled
            w = wb_refs[2 * l][...]                 # ((R+1)*Dp_l, Dp_{l+1}) bf16
            b = wb_refs[2 * l + 1][...]             # (1, Dp_{l+1})          f32

            # ---- stage 1: all relational messages in ONE MXU matmul ----------
            # msg[r*Np + j, :] = sum_i A[r, j, i] * h[i, :]
            msg = jnp.dot(adj, h, preferred_element_type=jnp.float32)   # (R*Np, Dp)
            msg = msg.astype(jnp.bfloat16)

            # ---- MC = [self | msg_0 | ... | msg_{R-1}] built in registers ----
            mc = jnp.concatenate(
                [h] + [msg[r * n_pad:(r + 1) * n_pad, :] for r in range(R)],
                axis=1)                                                 # bf16

            # ---- stage 2: one wide-K matmul against the fused weight ---------
            acc = jnp.dot(mc, w, preferred_element_type=jnp.float32)    # (Np, Dout_p)
            hf = jnp.maximum(acc + b, 0.0)                              # bias + ReLU (f32)
            h = hf.astype(jnp.bfloat16)                                 # next layer input

        # concat_hidden=False -> node feature is the last hidden; readout='sum'.
        node_ref[...] = hf
        row = jax.lax.broadcasted_iota(jnp.int32, (n_pad, 1), 0)
        mask = (row < num_valid_nodes).astype(jnp.float32)              # drop padded nodes
        graph_ref[...] = jnp.sum(hf * mask, axis=0, keepdims=True)

    return kernel


# ----------------------------------------------------------------------------
# Wrapper: host-side padding to lane-dense tiles + single pallas_call
# ----------------------------------------------------------------------------
def protein_classification_network(adj, x, params):
    """Forward pass of the stacked relational graph convs + sum readout.

    adj    : (R, N, N) dense relational adjacency, A[r, j, i] = w(i->j, r)
    x      : (N, Din)  input node features
    params : list of (w_self (Din_l, Dout_l), w_rel (R, Din_l, Dout_l), b (1, Dout_l))

    Returns {'graph_feature': (1, Dout), 'node_feature': (N, Dout)}.
    """
    R, N, _ = adj.shape
    num_layers = len(params)
    din0 = x.shape[1]
    douts = [w_self.shape[1] for (w_self, _, _) in params]
    dins = [din0] + douts[:-1]
    dout = douts[-1]

    n_pad = max(_ceil_to(N, LANE), LANE)
    din_pads = [max(_ceil_to(d, LANE), LANE) for d in dins]
    dout_pads = [max(_ceil_to(d, LANE), LANE) for d in douts]

    # --- host-side prep (cheap, pure XLA): zero-pad + cast MXU operands to bf16
    adj_p = jnp.zeros((R, n_pad, n_pad), jnp.float32).at[:, :N, :N].set(adj)
    adj2d = adj_p.reshape(R * n_pad, n_pad).astype(jnp.bfloat16)

    x_p = (jnp.zeros((n_pad, din_pads[0]), jnp.float32)
           .at[:N, :din0].set(x).astype(jnp.bfloat16))

    flat_inputs = [adj2d, x_p]
    for l, (w_self, w_rel, b) in enumerate(params):
        din, dp, dop = dins[l], din_pads[l], dout_pads[l]
        # fused weight rows: [W_self; W_rel_0; ...; W_rel_{R-1}], each block padded to dp
        w_cat = jnp.zeros(((R + 1) * dp, dop), jnp.float32)
        w_cat = w_cat.at[0:din, :douts[l]].set(w_self)
        for r in range(R):
            w_cat = w_cat.at[(r + 1) * dp:(r + 1) * dp + din, :douts[l]].set(w_rel[r])
        b_p = jnp.zeros((1, dop), jnp.float32).at[:, :douts[l]].set(b)
        flat_inputs.append(w_cat.astype(jnp.bfloat16))
        flat_inputs.append(b_p)                       # bias stays f32

    out_shape = (jax.ShapeDtypeStruct((n_pad, dout_pads[-1]), jnp.float32),
                 jax.ShapeDtypeStruct((1, dout_pads[-1]), jnp.float32))

    vmem_spec = pl.BlockSpec(memory_space=pltpu.MemorySpace.VMEM)
    kernel = _make_fused_kernel(num_layers, R, n_pad, N)

    node_p, graph_p = pl.pallas_call(
        kernel,
        out_shape=out_shape,
        in_specs=[vmem_spec] * len(flat_inputs),
        out_specs=(vmem_spec, vmem_spec),
    )(*flat_inputs)

    return {"graph_feature": graph_p[:, :dout],
            "node_feature": node_p[:N, :dout]}


# ----------------------------------------------------------------------------
# Parameters (synthetic, deterministic) and a pure-JAX reference
# ----------------------------------------------------------------------------
def init_params(key, dims, num_relation):
    """Per layer: (w_self, w_rel, b).  w_rel[r] corresponds to columns
    r*din:(r+1)*din of torchdrug's Linear(num_relation*din, dout) weight (transposed)."""
    R = num_relation
    params = []
    for i in range(len(dims) - 1):
        din, dout = dims[i], dims[i + 1]
        key, k1, k2, k3 = jax.random.split(key, 4)
        w_rel = jax.random.normal(k1, (R, din, dout), jnp.float32)
        w_rel = w_rel / jnp.sqrt(jnp.float32(R * din))
        w_self = jax.random.normal(k2, (din, dout), jnp.float32)
        w_self = w_self / jnp.sqrt(jnp.float32(din))
        b = 0.01 * jax.random.normal(k3, (1, dout), jnp.float32)
        params.append((w_self, w_rel, b))
    return params


def _round_bf16(a):
    return a.astype(jnp.bfloat16).astype(jnp.float32)


def reference_forward(adj, x, params):
    """Pure-JAX reference mimicking the kernel's bf16 operands / f32 accumulate."""
    R, N, _ = adj.shape
    adj2d = _round_bf16(adj.reshape(R * N, N))
    h = _round_bf16(x)
    hf = None
    for (w_self, w_rel, b) in params:
        din = h.shape[1]
        dout = w_self.shape[1]
        msg = _round_bf16(adj2d @ h)                                    # (R*N, din)
        mc = jnp.concatenate([h] + [msg[r * N:(r + 1) * N] for r in range(R)], axis=1)
        w_cat = jnp.concatenate([w_self[None], w_rel], axis=0).reshape((R + 1) * din, dout)
        hf = jnp.maximum(mc @ _round_bf16(w_cat) + b, 0.0)
        h = _round_bf16(hf)
    return hf, jnp.sum(hf, axis=0, keepdims=True)


# ----------------------------------------------------------------------------
# Main
# ----------------------------------------------------------------------------
if __name__ == "__main__":
    key = jax.random.PRNGKey(0)

    num_node = 16
    num_relation = 4
    input_dim = 8
    hidden_dims = [32, 32]
    num_edges = 48

    k_src, k_dst, k_rel, k_x, k_params = jax.random.split(key, 5)
    src = jax.random.randint(k_src, (num_edges,), 0, num_node)
    dst = jax.random.randint(k_dst, (num_edges,), 0, num_node)
    rel = jax.random.randint(k_rel, (num_edges,), 0, num_relation)
    edge_weight = jnp.ones((num_edges,), jnp.float32)

    # Densify the relational graph: A[r, j, i] += w for edge (i -> j, relation r)
    adj = jnp.zeros((num_relation, num_node, num_node), jnp.float32)
    adj = adj.at[rel, dst, src].add(edge_weight)

    x = jax.random.normal(k_x, (num_node, input_dim), jnp.float32)

    dims = [input_dim] + list(hidden_dims)
    params = init_params(k_params, dims, num_relation)

    out = protein_classification_network(adj, x, params)
    jax.block_until_ready(out)

    node_ref, graph_ref = reference_forward(adj, x, params)

    assert out["node_feature"].shape == (num_node, hidden_dims[-1])
    assert out["graph_feature"].shape == (1, hidden_dims[-1])
    assert bool(jnp.allclose(out["node_feature"], node_ref, rtol=2e-2, atol=2e-2))
    assert bool(jnp.allclose(out["graph_feature"], graph_ref, rtol=2e-2, atol=2e-2))
    print("KERNEL_OK")
</pallas_src>

<mosaic_0001>
module attributes {stable_mosaic.version = 11 : i64} {
  func.func @kernel(%arg0: memref<512x128xbf16, #tpu.memory_space<vmem>>, %arg1: memref<128x128xbf16, #tpu.memory_space<vmem>>, %arg2: memref<640x128xbf16, #tpu.memory_space<vmem>>, %arg3: memref<1x128xf32, #tpu.memory_space<vmem>>, %arg4: memref<640x128xbf16, #tpu.memory_space<vmem>>, %arg5: memref<1x128xf32, #tpu.memory_space<vmem>>, %arg6: memref<128x128xf32, #tpu.memory_space<vmem>>, %arg7: memref<1x128xf32, #tpu.memory_space<vmem>>) attributes {dimension_semantics = [], scalar_prefetch = 0 : i64, scratch_operands = 0 : i64, tpu.core_type = #tpu.core_type<tc>} {
    %c0 = arith.constant 0 : index
    %c0_0 = arith.constant 0 : index
    %0 = vector.load %arg0[%c0, %c0_0] : memref<512x128xbf16, #tpu.memory_space<vmem>>, vector<512x128xbf16>
    %c0_1 = arith.constant 0 : index
    %c0_2 = arith.constant 0 : index
    %1 = vector.load %arg1[%c0_1, %c0_2] : memref<128x128xbf16, #tpu.memory_space<vmem>>, vector<128x128xbf16>
    %c0_3 = arith.constant 0 : index
    %c0_4 = arith.constant 0 : index
    %2 = vector.load %arg2[%c0_3, %c0_4] : memref<640x128xbf16, #tpu.memory_space<vmem>>, vector<640x128xbf16>
    %c0_5 = arith.constant 0 : index
    %c0_6 = arith.constant 0 : index
    %3 = vector.load %arg3[%c0_5, %c0_6] : memref<1x128xf32, #tpu.memory_space<vmem>>, vector<1x128xf32>
    %cst = arith.constant dense<0.000000e+00> : vector<512x128xf32>
    %4 = tpu.matmul %0, %1, %cst {dimension_numbers = #tpu.dot_dimension_numbers<[1], [0], [0], [1], [0, 0, 1, 1], [], []>} : vector<512x128xbf16>, vector<128x128xbf16>, vector<512x128xf32> -> vector<512x128xf32>
    %5 = arith.truncf %4 : vector<512x128xf32> to vector<512x128xbf16>
    %6 = vector.extract_strided_slice %5 {offsets = [0, 0], sizes = [128, 128], strides = [1, 1]} : vector<512x128xbf16> to vector<128x128xbf16>
    %7 = vector.extract_strided_slice %5 {offsets = [128, 0], sizes = [128, 128], strides = [1, 1]} : vector<512x128xbf16> to vector<128x128xbf16>
    %8 = vector.extract_strided_slice %5 {offsets = [256, 0], sizes = [128, 128], strides = [1, 1]} : vector<512x128xbf16> to vector<128x128xbf16>
    %9 = vector.extract_strided_slice %5 {offsets = [384, 0], sizes = [128, 128], strides = [1, 1]} : vector<512x128xbf16> to vector<128x128xbf16>
    %10 = tpu.concatenate %1, %6, %7, %8, %9 in 1 : vector<128x128xbf16>, vector<128x128xbf16>, vector<128x128xbf16>, vector<128x128xbf16>, vector<128x128xbf16> -> vector<128x640xbf16>
    %cst_7 = arith.constant dense<0.000000e+00> : vector<128x128xf32>
    %11 = tpu.matmul %10, %2, %cst_7 {dimension_numbers = #tpu.dot_dimension_numbers<[1], [0], [0], [1], [0, 0, 1, 1], [], []>} : vector<128x640xbf16>, vector<640x128xbf16>, vector<128x128xf32> -> vector<128x128xf32>
    %12 = vector.broadcast %3 : vector<1x128xf32> to vector<128x128xf32>
    %13 = arith.addf %11, %12 : vector<128x128xf32>
    %cst_8 = arith.constant 0.000000e+00 : f32
    %14 = vector.broadcast %cst_8 : f32 to vector<128x128xf32>
    %15 = arith.maximumf %13, %14 : vector<128x128xf32>
    %16 = arith.truncf %15 : vector<128x128xf32> to vector<128x128xbf16>
    %c0_9 = arith.constant 0 : index
    %c0_10 = arith.constant 0 : index
    %17 = vector.load %arg4[%c0_9, %c0_10] : memref<640x128xbf16, #tpu.memory_space<vmem>>, vector<640x128xbf16>
    %c0_11 = arith.constant 0 : index
    %c0_12 = arith.constant 0 : index
    %18 = vector.load %arg5[%c0_11, %c0_12] : memref<1x128xf32, #tpu.memory_space<vmem>>, vector<1x128xf32>
    %cst_13 = arith.constant dense<0.000000e+00> : vector<512x128xf32>
    %19 = tpu.matmul %0, %16, %cst_13 {dimension_numbers = #tpu.dot_dimension_numbers<[1], [0], [0], [1], [0, 0, 1, 1], [], []>} : vector<512x128xbf16>, vector<128x128xbf16>, vector<512x128xf32> -> vector<512x128xf32>
    %20 = arith.truncf %19 : vector<512x128xf32> to vector<512x128xbf16>
    %21 = vector.extract_strided_slice %20 {offsets = [0, 0], sizes = [128, 128], strides = [1, 1]} : vector<512x128xbf16> to vector<128x128xbf16>
    %22 = vector.extract_strided_slice %20 {offsets = [128, 0], sizes = [128, 128], strides = [1, 1]} : vector<512x128xbf16> to vector<128x128xbf16>
    %23 = vector.extract_strided_slice %20 {offsets = [256, 0], sizes = [128, 128], strides = [1, 1]} : vector<512x128xbf16> to vector<128x128xbf16>
    %24 = vector.extract_strided_slice %20 {offsets = [384, 0], sizes = [128, 128], strides = [1, 1]} : vector<512x128xbf16> to vector<128x128xbf16>
    %25 = tpu.concatenate %16, %21, %22, %23, %24 in 1 : vector<128x128xbf16>, vector<128x128xbf16>, vector<128x128xbf16>, vector<128x128xbf16>, vector<128x128xbf16> -> vector<128x640xbf16>
    %cst_14 = arith.constant dense<0.000000e+00> : vector<128x128xf32>
    %26 = tpu.matmul %25, %17, %cst_14 {dimension_numbers = #tpu.dot_dimension_numbers<[1], [0], [0], [1], [0, 0, 1, 1], [], []>} : vector<128x640xbf16>, vector<640x128xbf16>, vector<128x128xf32> -> vector<128x128xf32>
    %27 = vector.broadcast %18 : vector<1x128xf32> to vector<128x128xf32>
    %28 = arith.addf %26, %27 : vector<128x128xf32>
    %cst_15 = arith.constant 0.000000e+00 : f32
    %29 = vector.broadcast %cst_15 : f32 to vector<128x128xf32>
    %30 = arith.maximumf %28, %29 : vector<128x128xf32>
    %c0_16 = arith.constant 0 : index
    %c0_17 = arith.constant 0 : index
    %31 = vector.load %arg6[%c0_16, %c0_17] : memref<128x128xf32, #tpu.memory_space<vmem>>, vector<128x128xf32>
    tpu.vector_store %arg6[%c0_16, %c0_17], %30 {strides = array<i32>} : memref<128x128xf32, #tpu.memory_space<vmem>>, vector<128x128xf32>,
    %32 = tpu.iota {dimensions = array<i32: 0>} : vector<128x1xi32>
    %c16_i32 = arith.constant 16 : i32
    %33 = vector.broadcast %c16_i32 : i32 to vector<128x1xi32>
    %34 = arith.cmpi slt, %32, %33 : vector<128x1xi32>
    %35 = arith.extui %34 : vector<128x1xi1> to vector<128x1xi32>
    %36 = arith.sitofp %35 : vector<128x1xi32> to vector<128x1xf32>
    %37 = vector.broadcast %36 : vector<128x1xf32> to vector<128x128xf32>
    %38 = arith.mulf %30, %37 : vector<128x128xf32>
    %cst_18 = arith.constant dense<0.000000e+00> : vector<128xf32>
    %39 = vector.multi_reduction <add>, %38, %cst_18 [0] : vector<128x128xf32> to vector<128xf32>
    %40 = vector.shape_cast %39 : vector<128xf32> to vector<1x128xf32>
    %c0_19 = arith.constant 0 : index
    %c0_20 = arith.constant 0 : index
    %41 = vector.load %arg7[%c0_19, %c0_20] : memref<1x128xf32, #tpu.memory_space<vmem>>, vector<1x128xf32>
    tpu.vector_store %arg7[%c0_19, %c0_20], %40 {strides = array<i32>} : memref<1x128xf32, #tpu.memory_space<vmem>>, vector<1x128xf32>,
    return
  }
}

</mosaic_0001>

<bundles_post_ra>
// kernel: tpu_custom_call.1
= control target key start
LH: loop header
LB: loop body
LE: loop exit
PB: predicated region body
PF: predicated region fallthrough
CT: control target
= control target key end

     0   :  { %13 = vsyncpa [#allocation3], 0  ;;  %s3816_s0 = inlined_call_operand.hbm [shape: bf16[512,128], index: 0, kind: input, shape index: {}]   ;;  %s3817_s1 = inlined_call_operand.hbm [shape: bf16[128,128], index: 1, kind: input, shape index: {}]   ;;  %s3818_s2 = inlined_call_operand.hbm [shape: bf16[640,128], index: 2, kind: input, shape index: {}]   ;;  %s3819_s3 = inlined_call_operand.vmem [shape: f32[1,128], index: 3, kind: input, shape index: {}]   ;;  %s3820_s4 = inlined_call_operand.hbm [shape: bf16[640,128], index: 4, kind: input, shape index: {}]   ;;  %s3821_s5 = inlined_call_operand.vmem [shape: f32[1,128], index: 5, kind: input, shape index: {}]   ;;  %s3822_s6 = inlined_call_operand.hbm [shape: f32[128,128], index: 6, kind: output, shape index: {0}]   ;;  %s3823_s7 = inlined_call_operand.hbm [shape: f32[1,128], index: 7, kind: output, shape index: {1}]  }
   0x1   :  { %14 = vsyncpa [#allocation6], 0 }
   0x2   :  { %15 = vsyncpa [#allocation9], 0 }
   0x3   :  { %16 = vsyncpa [#allocation4], 0 }
   0x4   :  { %17 = vsyncpa [#allocation12], 0  ;;  %s35_s26 = sshll.u32 %s3817_s1, 4  ;;  %s3464_s27 = smov [#allocation5]   ;;  %s36_s26 = int_to_ptr.hbm [resolvable:$true] %s35_s26 }
   0x5   :  { %s37_s28 = sshll.u32 %s3464_s27, 4  ;;  %s22_s8 = sshll.u32 %s3816_s0, 4  ;;  %s38_s28 = int_to_ptr.vmem [resolvable:$true] %s37_s28  ;;  %s23_s8 = int_to_ptr.hbm [resolvable:$true] %s22_s8 }
   0x6   :  { %s3465_s9 = smov 64   ;;  %s3466_s10 = smov 4  }
   0x7   :  { %43 = dma.hbm_to_vmem [thread:$0]  %s36_s26, 1024, %s38_s28, [#allocation6], %s3465_s9, %s3465_s9, %s3466_s10  }
   0x8   :  { %s3467_s11 = smov [#allocation2]   ;;  %s48_s15 = sshll.u32 %s3818_s2, 4  ;;  %s49_s15 = int_to_ptr.hbm [resolvable:$true] %s48_s15 }
   0x9   :  { %s24_s12 = sshll.u32 %s3467_s11, 4  ;;  %s63_s17 = sshll.u32 %s3820_s4, 4  ;;  %s25_s12 = int_to_ptr.vmem [resolvable:$true] %s24_s12  ;;  %s64_s17 = int_to_ptr.hbm [resolvable:$true] %s63_s17 }
   0xa   :  { %30 = dma.hbm_to_vmem [thread:$0]  %s23_s8, 4096, %s25_s12, [#allocation3], %s3465_s9, %s3465_s9, %s3466_s10  }
   0xb   :  { %s3468_s18 = smov [#allocation7]   ;;  %s3469_s0 = smov [#allocation8]  }
   0xc   :  { %s50_s19 = sshll.u32 %s3468_s18, 4  ;;  %s65_s20 = sshll.u32 %s3469_s0, 4  ;;  %s51_s19 = int_to_ptr.vmem [resolvable:$true] %s50_s19  ;;  %s66_s20 = int_to_ptr.vmem [resolvable:$true] %s65_s20 }
   0xd   :  { %56 = dma.hbm_to_vmem [thread:$0]  %s49_s15, 5120, %s51_s19, [#allocation6], %s3465_s9, %s3465_s9, %s3466_s10  }
   0xe   :  { %71 = dma.hbm_to_vmem [thread:$0]  %s64_s17, 5120, %s66_s20, [#allocation9], %s3465_s9, %s3465_s9, %s3466_s10  }
   0xf   :  { %3454 = dma.done.wait [#allocation3], 4096  }
  0x10   :  { %3455 = vsyncadd [#allocation3], 4294963200 }
  0x11   :  { %3456 = dma.done.wait [#allocation6], 6144  }
  0x12   :  { %3457 = vsyncadd [#allocation6], 4294961152 }
  0x13   :  { %3458 = dma.done.wait [#allocation9], 5120  }
  0x14   :  { %3459 = vsyncadd [#allocation9], 4294962176  ;;  %v3526_v0 = vld [vmem:[#allocation5 + $0x38] sm:$0xff]  ;;  %v3529_v1 = vld [vmem:[#allocation5 + $0x30] sm:$0xff]  ;;  %s2619_s25 = sshll.u32 %s3822_s6, 4  ;;  %s3471_s26 = smov 128   ;;  %s2620_s25 = int_to_ptr.hbm [resolvable:$true] %s2619_s25 }
  0x15   :  { %491 = vmatpush.bf16.msra.mxu0 %v3526_v0  ;;  %3250 = vmatpush.bf16.msra.mxu1 %v3526_v0  ;;  %v3533_v2 = vld [vmem:[#allocation5 + $0x28] sm:$0xff]  ;;  %v3537_v3 = vld [vmem:[#allocation5 + $0x20] sm:$0xff]  ;;  %v3541_v4 = vld [vmem:[#allocation5 + $0x18] sm:$0xff]  ;;  %s3472_s27 = smov 8   ;;  %s3473_s28 = smov [#allocation11]  }
  0x16   :  { %v3545_v5 = vld [vmem:[#allocation5 + $0x10] sm:$0xff]  ;;  %v3549_v6 = vld [vmem:[#allocation5 + $0x8] sm:$0xff]  ;;  %v3162_v7 = vld [vmem:[#allocation5] sm:$0xff]  ;;  %s2631_s29 = sshll.u32 %s3473_s28, 4  ;;  %s2633_s6 = sshll.u32 %s3823_s7, 4  ;;  %s2632_s29 = int_to_ptr.vmem [resolvable:$true] %s2631_s29  ;;  %s2634_s6 = int_to_ptr.hbm [resolvable:$true] %s2633_s6 }
  0x17   :  { %v3130_v8 = vld [vmem:[#allocation2] sm:$0xff]  ;;  %v3131_v9 = vld [vmem:[#allocation2 + $0x8] sm:$0xff]  ;;  %v3132_v10 = vld [vmem:[#allocation2 + $0x10] sm:$0xff] }
  0x18   :  { %v3133_v11 = vld [vmem:[#allocation2 + $0x18] sm:$0xff]  ;;  %v3158_v12 = vld [vmem:[#allocation2 + $0xe0] sm:$0xff]  ;;  %v3159_v14 = vld [vmem:[#allocation2 + $0xe8] sm:$0xff] }
  0x19   :  { %492 = vmatpush.bf16.msra.mxu0 %v3529_v1  ;;  %3251 = vmatpush.bf16.msra.mxu1 %v3529_v1  ;;  %v3134_v13 = vld [vmem:[#allocation2 + $0x20] sm:$0xff]  ;;  %v3185_v15 = vld [vmem:[#allocation7 + $0x78] sm:$0xff]  ;;  %v3135_v16 = vld [vmem:[#allocation2 + $0x28] sm:$0xff] }
  0x1a   :  { %1208 = vmatpush.bf16.msra.mxu2 %v3185_v15  ;;  %v3160_v17 = vld [vmem:[#allocation2 + $0xf0] sm:$0xff]  ;;  %v3177_v18 = vld [vmem:[#allocation7 + $0x38] sm:$0xff]  ;;  %v3183_v21 = vld [vmem:[#allocation7 + $0x68] sm:$0xff] }
  0x1b   :  { %v3184_v19 = vld [vmem:[#allocation7 + $0x70] sm:$0xff]  ;;  %v3175_v22 = vld [vmem:[#allocation7 + $0x28] sm:$0xff]  ;;  %v3182_v23 = vld [vmem:[#allocation7 + $0x60] sm:$0xff] }
  0x1c   :  { %v3176_v20 = vld [vmem:[#allocation7 + $0x30] sm:$0xff]  ;;  %v3174_v24 = vld [vmem:[#allocation7 + $0x20] sm:$0xff]  ;;  %v3181_v25 = vld [vmem:[#allocation7 + $0x58] sm:$0xff] }
  0x1d   :  { %493 = vmatpush.bf16.msra.mxu0 %v3533_v2  ;;  %3252 = vmatpush.bf16.msra.mxu1 %v3533_v2  ;;  %v3136_v26 = vld [vmem:[#allocation2 + $0x30] sm:$0xff]  ;;  %v3161_v27 = vld [vmem:[#allocation2 + $0xf8] sm:$0xff]  ;;  %v3179_v31 = vld [vmem:[#allocation7 + $0x48] sm:$0xff] }
  0x1e   :  { %1209 = vmatpush.bf16.msra.mxu2 %v3184_v19  ;;  %v3173_v28 = vld [vmem:[#allocation7 + $0x18] sm:$0xff]  ;;  %v3180_v29 = vld [vmem:[#allocation7 + $0x50] sm:$0xff]  ;;  %v3171_v32 = vld [vmem:[#allocation7 + $0x8] sm:$0xff] }
  0x1f   :  { %v3172_v30 = vld [vmem:[#allocation7 + $0x10] sm:$0xff]  ;;  %v3178_v33 = vld [vmem:[#allocation7 + $0x40] sm:$0xff]  ;;  %v3137_v35 = vld [vmem:[#allocation2 + $0x38] sm:$0xff] }
  0x20   :  { %v3170_v34 = vld [vmem:[#allocation7] sm:$0xff]  ;;  %v3139_v44 = vld [vmem:[#allocation2 + $0x48] sm:$0xff]  ;;  %v3140_v52 = vld [vmem:[#allocation2 + $0x50] sm:$0xff] }
  0x21   :  { %494 = vmatpush.bf16.msra.mxu0 %v3537_v3  ;;  %3253 = vmatpush.bf16.msra.mxu1 %v3537_v3  ;;  %v3138_v36 = vld [vmem:[#allocation2 + $0x40] sm:$0xff]  ;;  %v3141_v60 = vld [vmem:[#allocation2 + $0x58] sm:$0xff] }
  0x22   :  { %1210 = vmatpush.bf16.msra.mxu2 %v3183_v21  ;;  %v3193_v19 = vld [vmem:[#allocation7 + $0xb8] sm:$0xff] }
  0x23   :  { %3258 = vmatpush.bf16.msra.mxu3 %v3193_v19 }
  0x25   :  { %495 = vmatpush.bf16.msra.mxu0 %v3541_v4  ;;  %3254 = vmatpush.bf16.msra.mxu1 %v3541_v4 }
  0x26   :  { %1211 = vmatpush.bf16.msra.mxu2 %v3182_v23  ;;  %v3192_v23 = vld [vmem:[#allocation7 + $0xb0] sm:$0xff] }
  0x27   :  { %3259 = vmatpush.bf16.msra.mxu3 %v3192_v23 }
  0x29   :  { %496 = vmatpush.bf16.msra.mxu0 %v3545_v5  ;;  %3255 = vmatpush.bf16.msra.mxu1 %v3545_v5 }
  0x2a   :  { %1212 = vmatpush.bf16.msra.mxu2 %v3181_v25 }
  0x2d   :  { %497 = vmatpush.bf16.msra.mxu0 %v3549_v6  ;;  %3256 = vmatpush.bf16.msra.mxu1 %v3549_v6 }
  0x2e   :  { %1213 = vmatpush.bf16.msra.mxu2 %v3180_v29 }
  0x31   :  { %498 = vmatpush.bf16.msra.mxu0 %v3162_v7  ;;  %3257 = vmatpush.bf16.msra.mxu1 %v3162_v7 }
  0x32   :  { %1214 = vmatpush.bf16.msra.mxu2 %v3179_v31 }
  0x34   :  { %499 = vmatmul.bf16.vlgmr.msra.gmra.mxu0 %v3130_v8  ;;  %639 = vmatmul.bf16.vlgmr.msra.gmra.mxu1 %v3158_v12 }
  0x35   :  { %1159 = vmatpush.bf16.msrb.mxu1 %v3177_v18 }
  0x36   :  { %1215 = vmatpush.bf16.msra.mxu2 %v3178_v33  ;;  %v3144_v33 = vld [vmem:[#allocation2 + $0x70] sm:$0xff] }
  0x39   :  { %1160 = vmatpush.bf16.msrb.mxu1 %v3176_v20  ;;  %v3143_v20 = vld [vmem:[#allocation2 + $0x68] sm:$0xff] }
  0x3a   :  { %1257 = vmatpush.bf16.msrb.mxu2 %v3193_v19 }
  0x3d   :  { %1161 = vmatpush.bf16.msrb.mxu1 %v3175_v22 }
  0x3e   :  { %1258 = vmatpush.bf16.msrb.mxu2 %v3192_v23  ;;  %v3148_v23 = vld [vmem:[#allocation2 + $0x90] sm:$0xff] }
  0x41   :  { %1162 = vmatpush.bf16.msrb.mxu1 %v3174_v24 }
  0x44   :  { %504 = vmatmul.bf16.gmra.mxu0 %v3131_v9  ;;  %644 = vmatmul.bf16.gmra.mxu1 %v3159_v14 }
  0x45   :  { %1163 = vmatpush.bf16.msrb.mxu1 %v3173_v28  ;;  %v3190_v28 = vld [vmem:[#allocation7 + $0xa0] sm:$0xff] }
  0x49   :  { %1164 = vmatpush.bf16.msrb.mxu1 %v3172_v30 }
  0x4d   :  { %1165 = vmatpush.bf16.msrb.mxu1 %v3171_v32  ;;  %v3189_v32 = vld [vmem:[#allocation7 + $0x98] sm:$0xff] }
  0x51   :  { %1166 = vmatpush.bf16.msrb.mxu1 %v3170_v34 }
  0x54   :  { %509 = vmatmul.bf16.gmra.mxu0 %v3132_v10  ;;  %649 = vmatmul.bf16.gmra.mxu1 %v3160_v17  ;;  %v3142_v10 = vld [vmem:[#allocation2 + $0x60] sm:$0xff] }
  0x64   :  { %514 = vmatmul.bf16.gmra.mxu0 %v3133_v11  ;;  %654 = vmatmul.bf16.gmra.mxu1 %v3161_v27 }
  0x74   :  { %519 = vmatmul.bf16.gmra.mxu0 %v3134_v13  ;;  %1167 = vmatmul.bf16.vlgmr.msrb.gmra.mxu1 %v3162_v7 }
  0x84   :  { %524 = vmatmul.bf16.gmra.mxu0 %v3135_v16  ;;  %1172 = vmatmul.bf16.gmra.mxu1 %v3549_v6 }
  0x94   :  { %529 = vmatmul.bf16.gmra.mxu0 %v3136_v26  ;;  %1177 = vmatmul.bf16.gmra.mxu1 %v3545_v5 }
  0xa4   :  { %534 = vmatmul.bf16.gmra.mxu0 %v3137_v35  ;;  %1182 = vmatmul.bf16.gmra.mxu1 %v3541_v4  ;;  %v3188_v35 = vld [vmem:[#allocation7 + $0x90] sm:$0xff] }
  0xb1   :  { %v500_v37 = vpop.f32.mrf.mxu0  ;;  %v3557_v62 = vpop.f32.mrf.mxu1 }
  0xb2   :  { %v660_v38 = vpack.c.bf16 %v500_v37, %v500_v37 }
  0xb4   :  { %539 = vmatmul.bf16.gmra.mxu0 %v3138_v36  ;;  %v740_v41 = vunpack.c.l.b16 %v660_v38  ;;  %1187 = vmatmul.bf16.gmra.mxu1 %v3537_v3  ;;  %v3187_v36 = vld [vmem:[#allocation7 + $0x88] sm:$0xff] }
  0xb9   :  { %v502_v39 = vpop.f32.mrf.mxu0  ;;  %v3560_v6 = vpop.f32.mrf.mxu1 }
  0xba   :  { %v661_v40 = vpack.c.bf16 %v502_v39, %v502_v39 }
  0xbc   :  { %v741_v42 = vunpack.c.l.b16 %v661_v40 }
  0xbe   :  { %v756_v43 = vpack.c.b16 %v741_v42, %v740_v41  ;;  %v3186_v41 = vld [vmem:[#allocation7 + $0x80] sm:$0xff] }
  0xc0   :  { %1216 = vmatmul.bf16.vlgmr.msra.gmra.mxu2 %v756_v43 }
  0xc1   :  { %v505_v45 = vpop.f32.mrf.mxu0  ;;  %v3562_v12 = vpop.f32.mrf.mxu1 }
  0xc2   :  { %v662_v46 = vpack.c.bf16 %v505_v45, %v505_v45  ;;  %v3145_v45 = vld [vmem:[#allocation2 + $0x78] sm:$0xff] }
  0xc4   :  { %544 = vmatmul.bf16.gmra.mxu0 %v3139_v44  ;;  %v742_v49 = vunpack.c.l.b16 %v662_v46  ;;  %1192 = vmatmul.bf16.gmra.mxu1 %v3533_v2  ;;  %v3191_v2 = vld [vmem:[#allocation7 + $0xa8] sm:$0xff] }
  0xc5   :  { %1259 = vmatpush.bf16.msrb.mxu2 %v3191_v2  ;;  %3260 = vmatpush.bf16.msra.mxu3 %v3191_v2 }
  0xc9   :  { %v507_v47 = vpop.f32.mrf.mxu0  ;;  %v3565_v15 = vpop.f32.mrf.mxu1  ;;  %1260 = vmatpush.bf16.msrb.mxu2 %v3190_v28  ;;  %3261 = vmatpush.bf16.msra.mxu3 %v3190_v28 }
  0xca   :  { %v663_v48 = vpack.c.bf16 %v507_v47, %v507_v47 }
  0xcc   :  { %v743_v50 = vunpack.c.l.b16 %v663_v48 }
  0xcd   :  { %1261 = vmatpush.bf16.msrb.mxu2 %v3189_v32  ;;  %3262 = vmatpush.bf16.msra.mxu3 %v3189_v32 }
  0xce   :  { %v757_v51 = vpack.c.b16 %v743_v50, %v742_v49 }
  0xd0   :  { %1221 = vmatmul.bf16.gmra.mxu2 %v757_v51 }
  0xd1   :  { %v510_v53 = vpop.f32.mrf.mxu0  ;;  %v3567_v22 = vpop.f32.mrf.mxu1  ;;  %1262 = vmatpush.bf16.msrb.mxu2 %v3188_v35  ;;  %3263 = vmatpush.bf16.msra.mxu3 %v3188_v35 }
  0xd2   :  { %v664_v54 = vpack.c.bf16 %v510_v53, %v510_v53 }
  0xd4   :  { %549 = vmatmul.bf16.gmra.mxu0 %v3140_v52  ;;  %v744_v57 = vunpack.c.l.b16 %v664_v54  ;;  %1197 = vmatmul.bf16.gmra.mxu1 %v3529_v1  ;;  %v3146_v54 = vld [vmem:[#allocation2 + $0x80] sm:$0xff] }
  0xd5   :  { %1263 = vmatpush.bf16.msrb.mxu2 %v3187_v36  ;;  %3264 = vmatpush.bf16.msra.mxu3 %v3187_v36 }
  0xd9   :  { %v512_v55 = vpop.f32.mrf.mxu0  ;;  %v3570_v26 = vpop.f32.mrf.mxu1  ;;  %1264 = vmatpush.bf16.msrb.mxu2 %v3186_v41  ;;  %3265 = vmatpush.bf16.msra.mxu3 %v3186_v41 }
  0xda   :  { %v665_v56 = vpack.c.bf16 %v512_v55, %v512_v55 }
  0xdc   :  { %v745_v58 = vunpack.c.l.b16 %v665_v56 }
  0xde   :  { %v758_v59 = vpack.c.b16 %v745_v58, %v744_v57 }
  0xe0   :  { %1226 = vmatmul.bf16.gmra.mxu2 %v758_v59 }
  0xe1   :  { %v515_v61 = vpop.f32.mrf.mxu0  ;;  %v3572_v34 = vpop.f32.mrf.mxu1 }
  0xe2   :  { %v666_v63 = vpack.c.bf16 %v515_v61, %v515_v61 }
  0xe4   :  { %554 = vmatmul.bf16.gmra.mxu0 %v3141_v60  ;;  %v746_v4 = vunpack.c.l.b16 %v666_v63  ;;  %1202 = vmatmul.bf16.gmra.mxu1 %v3526_v0  ;;  %v3582_v63 = vld [vmem:[%s3819_s3] ss:$0 sm:$0xff] }
  0xe9   :  { %v517_v5 = vpop.f32.mrf.mxu0  ;;  %v3575_v39 = vpop.f32.mrf.mxu1 }
  0xea   :  { %v667_v7 = vpack.c.bf16 %v517_v5, %v517_v5 }
  0xec   :  { %v747_v8 = vunpack.c.l.b16 %v667_v7 }
  0xee   :  { %v759_v9 = vpack.c.b16 %v747_v8, %v746_v4  ;;  %v3147_v8 = vld [vmem:[#allocation2 + $0x88] sm:$0xff] }
  0xf0   :  { %1231 = vmatmul.bf16.gmra.mxu2 %v759_v9 }
  0xf1   :  { %v520_v11 = vpop.f32.mrf.mxu0  ;;  %v1168_v0 = vpop.f32.mrf.mxu1 }
  0xf2   :  { %v668_v13 = vpack.c.bf16 %v520_v11, %v520_v11  ;;  %v1169_v4 = vadd.f32 %v3582_v63, %v1168_v0 }
  0xf4   :  { %559 = vmatmul.bf16.gmra.mxu0 %v3142_v10  ;;  %v748_v16 = vunpack.c.l.b16 %v668_v13 }
  0xf9   :  { %v522_v14 = vpop.f32.mrf.mxu0  ;;  %v3577_v50 = vpop.f32.mrf.mxu1 }
  0xfa   :  { %v669_v3 = vpack.c.bf16 %v522_v14, %v522_v14 }
  0xfc   :  { %v749_v17 = vunpack.c.l.b16 %v669_v3 }
  0xfe   :  { %v760_v18 = vpack.c.b16 %v749_v17, %v748_v16 }
 0x100   :  { %1236 = vmatmul.bf16.gmra.mxu2 %v760_v18 }
 0x101   :  { %v525_v21 = vpop.f32.mrf.mxu0  ;;  %v1173_v56 = vpop.f32.mrf.mxu1 }
 0x102   :  { %v670_v24 = vpack.c.bf16 %v525_v21, %v525_v21  ;;  %v1174_v21 = vadd.f32 %v3582_v63, %v1173_v56 }
 0x104   :  { %564 = vmatmul.bf16.gmra.mxu0 %v3143_v20  ;;  %v750_v29 = vunpack.c.l.b16 %v670_v24 }
 0x109   :  { %v527_v25 = vpop.f32.mrf.mxu0  ;;  %v3584_v7 = vpop.f32.mrf.mxu1 }
 0x10a   :  { %v671_v27 = vpack.c.bf16 %v527_v25, %v527_v25 }
 0x10c   :  { %v751_v30 = vunpack.c.l.b16 %v671_v27 }
 0x10e   :  { %v761_v31 = vpack.c.b16 %v751_v30, %v750_v29 }
 0x110   :  { %1241 = vmatmul.bf16.gmra.mxu2 %v761_v31 }
 0x111   :  { %v530_v1 = vpop.f32.mrf.mxu0  ;;  %v1178_v3 = vpop.f32.mrf.mxu1 }
 0x112   :  { %v672_v37 = vpack.c.bf16 %v530_v1, %v530_v1  ;;  %v1179_v36 = vadd.f32 %v3582_v63, %v1178_v3  ;;  %v3200_v3 = vld [vmem:[#allocation7 + $0xf0] sm:$0xff] }
 0x114   :  { %569 = vmatmul.bf16.gmra.mxu0 %v3144_v33  ;;  %v752_v42 = vunpack.c.l.b16 %v672_v37  ;;  %v3149_v37 = vld [vmem:[#allocation2 + $0x98] sm:$0xff] }
 0x119   :  { %v532_v38 = vpop.f32.mrf.mxu0  ;;  %v3592_v25 = vpop.f32.mrf.mxu1 }
 0x11a   :  { %v673_v40 = vpack.c.bf16 %v532_v38, %v532_v38 }
 0x11c   :  { %v753_v43 = vunpack.c.l.b16 %v673_v40 }
 0x11e   :  { %v762_v44 = vpack.c.b16 %v753_v43, %v752_v42 }
 0x120   :  { %1246 = vmatmul.bf16.gmra.mxu2 %v762_v44 }
 0x121   :  { %v535_v46 = vpop.f32.mrf.mxu0  ;;  %v1183_v1 = vpop.f32.mrf.mxu1 }
 0x122   :  { %v674_v47 = vpack.c.bf16 %v535_v46, %v535_v46 }
 0x124   :  { %574 = vmatmul.bf16.gmra.mxu0 %v3145_v45  ;;  %v754_v51 = vunpack.c.l.b16 %v674_v47 }
 0x129   :  { %v537_v48 = vpop.f32.mrf.mxu0  ;;  %v3601_v42 = vpop.f32.mrf.mxu1 }
 0x12a   :  { %v675_v49 = vpack.c.bf16 %v537_v48, %v537_v48 }
 0x12c   :  { %v755_v52 = vunpack.c.l.b16 %v675_v49  ;;  %v1184_v49 = vadd.f32 %v3582_v63, %v1183_v1 }
 0x12e   :  { %v763_v53 = vpack.c.b16 %v755_v52, %v754_v51  ;;  %v3150_v51 = vld [vmem:[#allocation2 + $0xa0] sm:$0xff] }
 0x130   :  { %1251 = vmatmul.bf16.gmra.mxu2 %v763_v53 }
 0x131   :  { %v540_v55 = vpop.f32.mrf.mxu0  ;;  %v1188_v53 = vpop.f32.mrf.mxu1 }
 0x132   :  { %v676_v57 = vpack.c.bf16 %v540_v55, %v540_v55 }
 0x134   :  { %579 = vmatmul.bf16.gmra.mxu0 %v3146_v54  ;;  %v788_v60 = vunpack.c.l.b16 %v676_v57 }
 0x139   :  { %v542_v58 = vpop.f32.mrf.mxu0 }
 0x13a   :  { %v677_v59 = vpack.c.bf16 %v542_v58, %v542_v58 }
 0x13c   :  { %v789_v61 = vunpack.c.l.b16 %v677_v59 }
 0x13e   :  { %v804_v5 = vpack.c.b16 %v789_v61, %v788_v60  ;;  %v3610_v60 = vpop.f32.mrf.mxu1 }
 0x140   :  { %1265 = vmatmul.bf16.vlgmr.msrb.gmra.mxu2 %v804_v5 }
 0x141   :  { %v545_v9 = vpop.f32.mrf.mxu0 }
 0x142   :  { %v678_v13 = vpack.c.bf16 %v545_v9, %v545_v9  ;;  %v1189_v9 = vadd.f32 %v3582_v63, %v1188_v53 }
 0x143   :  { %v1217_v10 = vpop.f32.mrf.mxu2 }
 0x144   :  { %v3587_v11 = vadd.f32 %v1217_v10, %v1169_v4  ;;  %584 = vmatmul.bf16.gmra.mxu0 %v3147_v8  ;;  %v790_v18 = vunpack.c.l.b16 %v678_v13  ;;  %v3201_v8 = vld [vmem:[#allocation7 + $0xf8] sm:$0xff]  ;;  %v3151_v10 = vld [vmem:[#allocation2 + $0xa8] sm:$0xff] }
 0x145   :  { %1306 = vmatpush.bf16.msra.mxu1 %v3201_v8 }
 0x149   :  { %v547_v14 = vpop.f32.mrf.mxu0  ;;  %1307 = vmatpush.bf16.msra.mxu1 %v3200_v3 }
 0x14a   :  { %v679_v16 = vpack.c.bf16 %v547_v14, %v547_v14 }
 0x14b   :  { %v3589_v17 = vpop.f32.mrf.mxu2 }
 0x14c   :  { %v791_v19 = vunpack.c.l.b16 %v679_v16 }
 0x14e   :  { %v805_v20 = vpack.c.b16 %v791_v19, %v790_v18  ;;  %v1193_v18 = vpop.f32.mrf.mxu1  ;;  %v3199_v19 = vld [vmem:[#allocation7 + $0xe8] sm:$0xff] }
 0x14f   :  { %1308 = vmatpush.bf16.msra.mxu1 %v3199_v19  ;;  %v1194_v1 = vadd.f32 %v3582_v63, %v1193_v18 }
 0x150   :  { %1270 = vmatmul.bf16.gmra.mxu2 %v805_v20 }
 0x151   :  { %v550_v2 = vpop.f32.mrf.mxu0 }
 0x152   :  { %v680_v28 = vpack.c.bf16 %v550_v2, %v550_v2 }
 0x153   :  { %v1222_v24 = vpop.f32.mrf.mxu2 }
 0x154   :  { %v3594_v27 = vadd.f32 %v1222_v24, %v1174_v21  ;;  %589 = vmatmul.bf16.gmra.mxu0 %v3148_v23  ;;  %v792_v32 = vunpack.c.l.b16 %v680_v28  ;;  %v3198_v24 = vld [vmem:[#allocation7 + $0xe0] sm:$0xff] }
 0x155   :  { %1309 = vmatpush.bf16.msra.mxu1 %v3198_v24 }
 0x159   :  { %v552_v29 = vpop.f32.mrf.mxu0 }
 0x15a   :  { %v681_v30 = vpack.c.bf16 %v552_v29, %v552_v29 }
 0x15b   :  { %v3596_v31 = vpop.f32.mrf.mxu2 }
 0x15c   :  { %v793_v33 = vunpack.c.l.b16 %v681_v30 }
 0x15e   :  { %v806_v35 = vpack.c.b16 %v793_v33, %v792_v32  ;;  %v3617_v32 = vpop.f32.mrf.mxu1  ;;  %v3197_v33 = vld [vmem:[#allocation7 + $0xd8] sm:$0xff] }
 0x15f   :  { %1310 = vmatpush.bf16.msra.mxu1 %v3197_v33 }
 0x160   :  { %1275 = vmatmul.bf16.gmra.mxu2 %v806_v35  ;;  %v3152_v35 = vld [vmem:[#allocation2 + $0xb0] sm:$0xff] }
 0x161   :  { %v555_v38 = vpop.f32.mrf.mxu0 }
 0x162   :  { %v682_v43 = vpack.c.bf16 %v555_v38, %v555_v38  ;;  %v3196_v38 = vld [vmem:[#allocation7 + $0xd0] sm:$0xff] }
 0x163   :  { %v1227_v40 = vpop.f32.mrf.mxu2  ;;  %1311 = vmatpush.bf16.msra.mxu1 %v3196_v38 }
 0x164   :  { %v3599_v41 = vadd.f32 %v1227_v40, %v1179_v36  ;;  %594 = vmatmul.bf16.gmra.mxu0 %v3149_v37  ;;  %v794_v0 = vunpack.c.l.b16 %v682_v43  ;;  %v3195_v43 = vld [vmem:[#allocation7 + $0xc8] sm:$0xff] }
 0x167   :  { %1312 = vmatpush.bf16.msra.mxu1 %v3195_v43 }
 0x169   :  { %v557_v44 = vpop.f32.mrf.mxu0 }
 0x16a   :  { %v683_v45 = vpack.c.bf16 %v557_v44, %v557_v44 }
 0x16b   :  { %v3603_v46 = vpop.f32.mrf.mxu2 }
 0x16c   :  { %v795_v47 = vunpack.c.l.b16 %v683_v45 }
 0x16e   :  { %v807_v48 = vpack.c.b16 %v795_v47, %v794_v0  ;;  %v1198_v0 = vpop.f32.mrf.mxu1 }
 0x170   :  { %1280 = vmatmul.bf16.gmra.mxu2 %v807_v48 }
 0x171   :  { %v560_v52 = vpop.f32.mrf.mxu0 }
 0x172   :  { %v684_v56 = vpack.c.bf16 %v560_v52, %v560_v52 }
 0x173   :  { %v1232_v54 = vpop.f32.mrf.mxu2 }
 0x174   :  { %v3606_v55 = vadd.f32 %v1232_v54, %v1184_v49  ;;  %599 = vmatmul.bf16.gmra.mxu0 %v3150_v51  ;;  %v796_v61 = vunpack.c.l.b16 %v684_v56  ;;  %v3194_v49 = vld [vmem:[#allocation7 + $0xc0] sm:$0xff]  ;;  %v1199_v54 = vadd.f32 %v3582_v63, %v1198_v0  ;;  %v3153_v56 = vld [vmem:[#allocation2 + $0xb8] sm:$0xff] }
 0x175   :  { %1313 = vmatpush.bf16.msra.mxu1 %v3194_v49 }
 0x179   :  { %v562_v57 = vpop.f32.mrf.mxu0 }
 0x17a   :  { %v685_v58 = vpack.c.bf16 %v562_v57, %v562_v57 }
 0x17b   :  { %v3608_v59 = vpop.f32.mrf.mxu2 }
 0x17c   :  { %v797_v5 = vunpack.c.l.b16 %v685_v58 }
 0x17e   :  { %v808_v4 = vpack.c.b16 %v797_v5, %v796_v61  ;;  %v3625_v61 = vpop.f32.mrf.mxu1 }
 0x180   :  { %1285 = vmatmul.bf16.vlgmr.msra.gmra.mxu3 %v808_v4 }
 0x181   :  { %v565_v13 = vpop.f32.mrf.mxu0 }
 0x182   :  { %v686_v20 = vpack.c.bf16 %v565_v13, %v565_v13 }
 0x183   :  { %v1237_v14 = vpop.f32.mrf.mxu2 }
 0x184   :  { %v3613_v16 = vadd.f32 %v1237_v14, %v1189_v9  ;;  %604 = vmatmul.bf16.gmra.mxu0 %v3151_v10  ;;  %v798_v28 = vunpack.c.l.b16 %v686_v20  ;;  %v3154_v20 = vld [vmem:[#allocation2 + $0xc0] sm:$0xff] }
 0x186   :  { %v1203_v3 = vpop.f32.mrf.mxu1 }
 0x187   :  { %v1204_v19 = vadd.f32 %v3582_v63, %v1203_v3 }
 0x189   :  { %v567_v21 = vpop.f32.mrf.mxu0 }
 0x18a   :  { %v687_v23 = vpack.c.bf16 %v567_v21, %v567_v21 }
 0x18b   :  { %v3615_v2 = vpop.f32.mrf.mxu2 }
 0x18c   :  { %v799_v29 = vunpack.c.l.b16 %v687_v23 }
 0x18e   :  { %v809_v30 = vpack.c.b16 %v799_v29, %v798_v28 }
 0x190   :  { %1290 = vmatmul.bf16.gmra.mxu3 %v809_v30 }
 0x191   :  { %v570_v36 = vpop.f32.mrf.mxu0 }
 0x192   :  { %v688_v44 = vpack.c.bf16 %v570_v36, %v570_v36 }
 0x193   :  { %v1242_v37 = vpop.f32.mrf.mxu2 }
 0x194   :  { %v3620_v40 = vadd.f32 %v1242_v37, %v1194_v1  ;;  %609 = vmatmul.bf16.gmra.mxu0 %v3152_v35  ;;  %v800_v51 = vunpack.c.l.b16 %v688_v44  ;;  %v3155_v37 = vld [vmem:[#allocation2 + $0xc8] sm:$0xff] }
 0x199   :  { %v572_v45 = vpop.f32.mrf.mxu0 }
 0x19a   :  { %v689_v47 = vpack.c.bf16 %v572_v45, %v572_v45 }
 0x19b   :  { %v3622_v48 = vpop.f32.mrf.mxu2 }
 0x19c   :  { %v801_v52 = vunpack.c.l.b16 %v689_v47 }
 0x19e   :  { %v810_v53 = vpack.c.b16 %v801_v52, %v800_v51 }
 0x1a0   :  { %1295 = vmatmul.bf16.gmra.mxu3 %v810_v53 }
 0x1a1   :  { %v575_v57 = vpop.f32.mrf.mxu0 }
 0x1a2   :  { %v690_v4 = vpack.c.bf16 %v575_v57, %v575_v57 }
 0x1a3   :  { %v1247_v58 = vpop.f32.mrf.mxu2 }
 0x1a4   :  { %v3627_v5 = vadd.f32 %v1247_v58, %v1199_v54  ;;  %614 = vmatmul.bf16.gmra.mxu0 %v3153_v56  ;;  %v802_v13 = vunpack.c.l.b16 %v690_v4  ;;  %v3156_v54 = vld [vmem:[#allocation2 + $0xd0] sm:$0xff] }
 0x1a9   :  { %v577_v8 = vpop.f32.mrf.mxu0 }
 0x1aa   :  { %v691_v9 = vpack.c.bf16 %v577_v8, %v577_v8 }
 0x1ab   :  { %v3629_v10 = vpop.f32.mrf.mxu2 }
 0x1ac   :  { %v803_v14 = vunpack.c.l.b16 %v691_v9 }
 0x1ae   :  { %v811_v18 = vpack.c.b16 %v803_v14, %v802_v13 }
 0x1b0   :  { %1300 = vmatmul.bf16.gmra.mxu3 %v811_v18  ;;  %v3157_v18 = vld [vmem:[#allocation2 + $0xd8] sm:$0xff] }
 0x1b1   :  { %v580_v21 = vpop.f32.mrf.mxu0 }
 0x1b2   :  { %v692_v28 = vpack.c.bf16 %v580_v21, %v580_v21 }
 0x1b3   :  { %v1252_v23 = vpop.f32.mrf.mxu2 }
 0x1b4   :  { %v3632_v24 = vadd.f32 %v1252_v23, %v1204_v19  ;;  %619 = vmatmul.bf16.gmra.mxu0 %v3154_v20  ;;  %v836_v1 = vunpack.c.l.b16 %v692_v28 }
 0x1b9   :  { %v582_v29 = vpop.f32.mrf.mxu0 }
 0x1ba   :  { %v693_v30 = vpack.c.bf16 %v582_v29, %v582_v29 }
 0x1bb   :  { %v3634_v33 = vpop.f32.mrf.mxu2 }
 0x1bc   :  { %v837_v35 = vunpack.c.l.b16 %v693_v30 }
 0x1be   :  { %v852_v36 = vpack.c.b16 %v837_v35, %v836_v1 }
 0x1c0   :  { %1314 = vmatmul.bf16.vlgmr.msra.gmra.mxu1 %v852_v36 }
 0x1c1   :  { %v585_v38 = vpop.f32.mrf.mxu0 }
 0x1c2   :  { %v694_v45 = vpack.c.bf16 %v585_v38, %v585_v38 }
 0x1c3   :  { %v1266_v43 = vpop.f32.mrf.mxu2 }
 0x1c4   :  { %v3637_v44 = vadd.f32 %v1266_v43, %v3587_v11  ;;  %624 = vmatmul.bf16.gmra.mxu0 %v3155_v37  ;;  %v838_v51 = vunpack.c.l.b16 %v694_v45 }
 0x1c9   :  { %v587_v0 = vpop.f32.mrf.mxu0 }
 0x1ca   :  { %v695_v47 = vpack.c.bf16 %v587_v0, %v587_v0 }
 0x1cb   :  { %v3639_v49 = vpop.f32.mrf.mxu2 }
 0x1cc   :  { %v839_v52 = vunpack.c.l.b16 %v695_v47 }
 0x1ce   :  { %v853_v53 = vpack.c.b16 %v839_v52, %v838_v51  ;;  %v3209_v52 = vld [vmem:[#allocation7 + $0x138] sm:$0xff] }
 0x1cf   :  { %1355 = vmatpush.bf16.msra.mxu2 %v3209_v52 }
 0x1d0   :  { %1319 = vmatmul.bf16.gmra.mxu1 %v853_v53 }
 0x1d1   :  { %v590_v56 = vpop.f32.mrf.mxu0 }
 0x1d2   :  { %v696_v4 = vpack.c.bf16 %v590_v56, %v590_v56  ;;  %v3207_v56 = vld [vmem:[#allocation7 + $0x128] sm:$0xff] }
 0x1d3   :  { %v1271_v57 = vpop.f32.mrf.mxu2 }
 0x1d4   :  { %v3642_v58 = vadd.f32 %v1271_v57, %v3594_v27  ;;  %629 = vmatmul.bf16.gmra.mxu0 %v3156_v54  ;;  %v840_v13 = vunpack.c.l.b16 %v696_v4  ;;  %v3208_v54 = vld [vmem:[#allocation7 + $0x130] sm:$0xff] }
 0x1d5   :  { %1356 = vmatpush.bf16.msra.mxu2 %v3208_v54 }
 0x1d9   :  { %v592_v11 = vpop.f32.mrf.mxu0  ;;  %1357 = vmatpush.bf16.msra.mxu2 %v3207_v56 }
 0x1da   :  { %v697_v8 = vpack.c.bf16 %v592_v11, %v592_v11 }
 0x1db   :  { %v3644_v9 = vpop.f32.mrf.mxu2 }
 0x1dc   :  { %v841_v14 = vunpack.c.l.b16 %v697_v8  ;;  %v3206_v8 = vld [vmem:[#allocation7 + $0x120] sm:$0xff] }
 0x1dd   :  { %1358 = vmatpush.bf16.msra.mxu2 %v3206_v8 }
 0x1de   :  { %v854_v3 = vpack.c.b16 %v841_v14, %v840_v13 }
 0x1e0   :  { %1324 = vmatmul.bf16.gmra.mxu1 %v854_v3  ;;  %v3205_v3 = vld [vmem:[#allocation7 + $0x118] sm:$0xff] }
 0x1e1   :  { %v595_v19 = vpop.f32.mrf.mxu0  ;;  %1359 = vmatpush.bf16.msra.mxu2 %v3205_v3 }
 0x1e2   :  { %v698_v23 = vpack.c.bf16 %v595_v19, %v595_v19  ;;  %v3204_v19 = vld [vmem:[#allocation7 + $0x110] sm:$0xff] }
 0x1e3   :  { %v1276_v20 = vpop.f32.mrf.mxu2 }
 0x1e4   :  { %v3647_v21 = vadd.f32 %v1276_v20, %v3599_v41  ;;  %634 = vmatmul.bf16.gmra.mxu0 %v3157_v18  ;;  %v842_v30 = vunpack.c.l.b16 %v698_v23  ;;  %v3203_v20 = vld [vmem:[#allocation7 + $0x108] sm:$0xff] }
 0x1e5   :  { %1360 = vmatpush.bf16.msra.mxu2 %v3204_v19 }
 0x1e9   :  { %v597_v27 = vpop.f32.mrf.mxu0  ;;  %1361 = vmatpush.bf16.msra.mxu2 %v3203_v20 }
 0x1ea   :  { %v699_v28 = vpack.c.bf16 %v597_v27, %v597_v27 }
 0x1eb   :  { %v3649_v29 = vpop.f32.mrf.mxu2 }
 0x1ec   :  { %v843_v1 = vunpack.c.l.b16 %v699_v28 }
 0x1ee   :  { %v855_v35 = vpack.c.b16 %v843_v1, %v842_v30  ;;  %v3202_v30 = vld [vmem:[#allocation7 + $0x100] sm:$0xff] }
 0x1ef   :  { %1362 = vmatpush.bf16.msra.mxu2 %v3202_v30 }
 0x1f0   :  { %1329 = vmatmul.bf16.gmra.mxu1 %v855_v35 }
 0x1f1   :  { %v600_v36 = vpop.f32.mrf.mxu0 }
 0x1f2   :  { %v700_v43 = vpack.c.bf16 %v600_v36, %v600_v36 }
 0x1f3   :  { %v1281_v37 = vpop.f32.mrf.mxu2 }
 0x1f4   :  { %v3652_v38 = vadd.f32 %v1281_v37, %v3606_v55  ;;  %v844_v41 = vunpack.c.l.b16 %v700_v43 }
 0x1f9   :  { %v602_v45 = vpop.f32.mrf.mxu0 }
 0x1fa   :  { %v701_v0 = vpack.c.bf16 %v602_v45, %v602_v45 }
 0x1fc   :  { %v845_v47 = vunpack.c.l.b16 %v701_v0 }
 0x1fe   :  { %v856_v51 = vpack.c.b16 %v845_v47, %v844_v41 }
 0x200   :  { %1334 = vmatmul.bf16.gmra.mxu1 %v856_v51 }
 0x201   :  { %v605_v53 = vpop.f32.mrf.mxu0 }
 0x202   :  { %v702_v57 = vpack.c.bf16 %v605_v53, %v605_v53 }
 0x204   :  { %v846_v55 = vunpack.c.l.b16 %v702_v57 }
 0x209   :  { %v607_v4 = vpop.f32.mrf.mxu0 }
 0x20a   :  { %v703_v11 = vpack.c.bf16 %v607_v4, %v607_v4 }
 0x20c   :  { %v847_v13 = vunpack.c.l.b16 %v703_v11 }
 0x20e   :  { %v857_v14 = vpack.c.b16 %v847_v13, %v846_v55 }
 0x210   :  { %1339 = vmatmul.bf16.gmra.mxu1 %v857_v14 }
 0x211   :  { %v610_v18 = vpop.f32.mrf.mxu0 }
 0x212   :  { %v704_v23 = vpack.c.bf16 %v610_v18, %v610_v18 }
 0x214   :  { %v848_v1 = vunpack.c.l.b16 %v704_v23 }
 0x219   :  { %v612_v27 = vpop.f32.mrf.mxu0 }
 0x21a   :  { %v705_v28 = vpack.c.bf16 %v612_v27, %v612_v27 }
 0x21c   :  { %v849_v35 = vunpack.c.l.b16 %v705_v28 }
 0x21e   :  { %v858_v36 = vpack.c.b16 %v849_v35, %v848_v1 }
 0x220   :  { %1344 = vmatmul.bf16.gmra.mxu1 %v858_v36 }
 0x221   :  { %v615_v37 = vpop.f32.mrf.mxu0 }
 0x222   :  { %v706_v43 = vpack.c.bf16 %v615_v37, %v615_v37 }
 0x224   :  { %v850_v41 = vunpack.c.l.b16 %v706_v43 }
 0x229   :  { %v617_v45 = vpop.f32.mrf.mxu0 }
 0x22a   :  { %v707_v0 = vpack.c.bf16 %v617_v45, %v617_v45 }
 0x22c   :  { %v851_v47 = vunpack.c.l.b16 %v707_v0 }
 0x22e   :  { %v859_v51 = vpack.c.b16 %v851_v47, %v850_v41 }
 0x230   :  { %1349 = vmatmul.bf16.gmra.mxu1 %v859_v51  ;;  %v716_v51 = vpack.c.bf16 %v3557_v62, %v3557_v62  ;;  %v720_v62 = vpack.c.bf16 %v3567_v22, %v3567_v22  ;;  %v722_v22 = vpack.c.bf16 %v3572_v34, %v3572_v34  ;;  %v1171_v34 = vadd.f32 %v3582_v63, %v3577_v50 }
 0x231   :  { %v620_v52 = vpop.f32.mrf.mxu0 }
 0x232   :  { %v708_v53 = vpack.c.bf16 %v620_v52, %v620_v52  ;;  %v717_v52 = vpack.c.bf16 %v3560_v6, %v3560_v6  ;;  %v721_v6 = vpack.c.bf16 %v3570_v26, %v3570_v26  ;;  %v723_v26 = vpack.c.bf16 %v3575_v39, %v3575_v39 }
 0x234   :  { %v884_v57 = vunpack.c.l.b16 %v708_v53  ;;  %v892_v53 = vunpack.c.l.b16 %v716_v51  ;;  %v1220_v51 = vadd.f32 %v3589_v17, %v1171_v34 }
 0x239   :  { %v622_v54 = vpop.f32.mrf.mxu0 }
 0x23a   :  { %v709_v56 = vpack.c.bf16 %v622_v54, %v622_v54  ;;  %v893_v54 = vunpack.c.l.b16 %v717_v52 }
 0x23c   :  { %v885_v4 = vunpack.c.l.b16 %v709_v56  ;;  %v904_v56 = vpack.c.b16 %v893_v54, %v892_v53  ;;  %v1269_v53 = vadd.f32 %v3639_v49, %v1220_v51 }
 0x23e   :  { %v900_v11 = vpack.c.b16 %v885_v4, %v884_v57  ;;  %v718_v57 = vpack.c.bf16 %v3562_v12, %v3562_v12  ;;  %v719_v4 = vpack.c.bf16 %v3565_v15, %v3565_v15  ;;  %v897_v12 = vunpack.c.l.b16 %v721_v6 }
 0x240   :  { %1363 = vmatmul.bf16.vlgmr.msra.gmra.mxu2 %v900_v11  ;;  %v894_v11 = vunpack.c.l.b16 %v718_v57 }
 0x241   :  { %v625_v8 = vpop.f32.mrf.mxu0 }
 0x242   :  { %v710_v55 = vpack.c.bf16 %v625_v8, %v625_v8  ;;  %v895_v8 = vunpack.c.l.b16 %v719_v4 }
 0x244   :  { %v886_v3 = vunpack.c.l.b16 %v710_v55  ;;  %v905_v55 = vpack.c.b16 %v895_v8, %v894_v11 }
 0x249   :  { %v627_v13 = vpop.f32.mrf.mxu0 }
 0x24a   :  { %v711_v14 = vpack.c.bf16 %v627_v13, %v627_v13  ;;  %v3217_v13 = vld [vmem:[#allocation8 + $0x38] sm:$0xff] }
 0x24b   :  { %2233 = vmatpush.bf16.msrb.mxu1 %v3217_v13 }
 0x24c   :  { %v887_v18 = vunpack.c.l.b16 %v711_v14  ;;  %v3216_v14 = vld [vmem:[#allocation8 + $0x30] sm:$0xff] }
 0x24e   :  { %v901_v19 = vpack.c.b16 %v887_v18, %v886_v3  ;;  %v3666_v3 = vpop.f32.mrf.mxu1  ;;  %v896_v18 = vunpack.c.l.b16 %v720_v62  ;;  %v1176_v62 = vadd.f32 %v3582_v63, %v3584_v7 }
 0x24f   :  { %2234 = vmatpush.bf16.msrb.mxu1 %v3216_v14 }
 0x250   :  { %1368 = vmatmul.bf16.gmra.mxu2 %v901_v19  ;;  %v3215_v19 = vld [vmem:[#allocation8 + $0x28] sm:$0xff]  ;;  %v906_v15 = vpack.c.b16 %v897_v12, %v896_v18  ;;  %v1225_v49 = vadd.f32 %v3596_v31, %v1176_v62 }
 0x251   :  { %v630_v20 = vpop.f32.mrf.mxu0 }
 0x252   :  { %v712_v23 = vpack.c.bf16 %v630_v20, %v630_v20 }
 0x253   :  { %2235 = vmatpush.bf16.msrb.mxu1 %v3215_v19  ;;  %v1274_v19 = vadd.f32 %v3644_v9, %v1225_v49 }
 0x254   :  { %v888_v30 = vunpack.c.l.b16 %v712_v23  ;;  %v3214_v23 = vld [vmem:[#allocation8 + $0x20] sm:$0xff] }
 0x256   :  { %v1315_v20 = vpop.f32.mrf.mxu1 }
 0x257   :  { %2236 = vmatpush.bf16.msrb.mxu1 %v3214_v23 }
 0x259   :  { %v632_v27 = vpop.f32.mrf.mxu0 }
 0x25a   :  { %v713_v28 = vpack.c.bf16 %v632_v27, %v632_v27  ;;  %v3213_v27 = vld [vmem:[#allocation8 + $0x18] sm:$0xff] }
 0x25b   :  { %2237 = vmatpush.bf16.msrb.mxu1 %v3213_v27 }
 0x25c   :  { %v889_v1 = vunpack.c.l.b16 %v713_v28  ;;  %v3212_v28 = vld [vmem:[#allocation8 + $0x10] sm:$0xff] }
 0x25e   :  { %v902_v35 = vpack.c.b16 %v889_v1, %v888_v30  ;;  %v898_v30 = vunpack.c.l.b16 %v722_v22  ;;  %v899_v1 = vunpack.c.l.b16 %v723_v26 }
 0x25f   :  { %2238 = vmatpush.bf16.msrb.mxu1 %v3212_v28 }
 0x260   :  { %1373 = vmatmul.bf16.gmra.mxu2 %v902_v35  ;;  %v1317_v35 = vpop.f32.mrf.mxu1 }
 0x261   :  { %v635_v36 = vpop.f32.mrf.mxu0 }
 0x262   :  { %v714_v37 = vpack.c.bf16 %v635_v36, %v635_v36  ;;  %v3211_v36 = vld [vmem:[#allocation8 + $0x8] sm:$0xff] }
 0x263   :  { %2239 = vmatpush.bf16.msrb.mxu1 %v3211_v36 }
 0x264   :  { %v890_v0 = vunpack.c.l.b16 %v714_v37  ;;  %v907_v37 = vpack.c.b16 %v899_v1, %v898_v30 }
 0x269   :  { %v637_v43 = vpop.f32.mrf.mxu0 }
 0x26a   :  { %v715_v45 = vpack.c.bf16 %v637_v43, %v637_v43  ;;  %v3210_v43 = vld [vmem:[#allocation8] sm:$0xff] }
 0x26b   :  { %2240 = vmatpush.bf16.msrb.mxu1 %v3210_v43 }
 0x26c   :  { %v891_v41 = vunpack.c.l.b16 %v715_v45  ;;  %v1320_v45 = vpop.f32.mrf.mxu1 }
 0x26d   :  { %v1321_v17 = vadd.f32 %v1320_v45, %v3642_v58  ;;  %v1181_v58 = vadd.f32 %v3582_v63, %v3592_v25 }
 0x26e   :  { %v903_v47 = vpack.c.b16 %v891_v41, %v890_v0  ;;  %v3672_v0 = vpop.f32.mrf.mxu2 }
 0x26f   :  { %v1230_v9 = vadd.f32 %v3603_v46, %v1181_v58 }
 0x270   :  { %1378 = vmatmul.bf16.gmra.mxu2 %v903_v47  ;;  %v1316_v47 = vadd.f32 %v1315_v20, %v3637_v44 }
 0x271   :  { %v1279_v45 = vadd.f32 %v3649_v29, %v1230_v9 }
 0x274   :  { %v1322_v41 = vpop.f32.mrf.mxu1 }
 0x27c   :  { %v1325_v54 = vpop.f32.mrf.mxu1 }
 0x27d   :  { %v1326_v31 = vadd.f32 %v1325_v54, %v3647_v21  ;;  %v1186_v21 = vadd.f32 %v3582_v63, %v3601_v42 }
 0x27f   :  { %v1235_v29 = vadd.f32 %v3608_v59, %v1186_v21 }
 0x280   :  { %1383 = vmatmul.bf16.gmra.mxu2 %v904_v56  ;;  %v1318_v56 = vadd.f32 %v1317_v35, %v1269_v53 }
 0x284   :  { %v1327_v14 = vpop.f32.mrf.mxu1 }
 0x28c   :  { %v1330_v7 = vpop.f32.mrf.mxu1 }
 0x290   :  { %1388 = vmatmul.bf16.gmra.mxu2 %v905_v55 }
 0x294   :  { %v1332_v43 = vpop.f32.mrf.mxu1 }
 0x2a0   :  { %1393 = vmatmul.bf16.gmra.mxu2 %v906_v15  ;;  %v1323_v15 = vadd.f32 %v1322_v41, %v1274_v19  ;;  %v1328_v41 = vadd.f32 %v1327_v14, %v1279_v45 }
 0x2b0   :  { %1398 = vmatmul.bf16.gmra.mxu2 %v907_v37 }
 0x2c3   :  { %v1364_v39 = vpop.f32.mrf.mxu2 }
 0x2c4   :  { %v1365_v52 = vadd.f32 %v1364_v39, %v1316_v47 }
 0x2c6   :  { %v1404_v57 = vmax.f32 %v1365_v52, 0.0  ;;  %v1286_v52 = vpop.f32.mrf.mxu3 }
 0x2c8   :  { %v1420_v8 = vpack.c.bf16 %v1404_v57, %v1404_v57 }
 0x2ca   :  { %v1533_v50 = vunpack.c.l.b16 %v1420_v8 }
 0x2cb   :  { %v1366_v4 = vpop.f32.mrf.mxu2 }
 0x2cc   :  { %v1367_v11 = vadd.f32 %v1366_v4, %v1318_v56  ;;  %v1335_v56 = vpop.f32.mrf.mxu1  ;;  %v1331_v4 = vadd.f32 %v1330_v7, %v3652_v38  ;;  %v1191_v38 = vadd.f32 %v3582_v63, %v3610_v60 }
 0x2ce   :  { %v1405_v55 = vmax.f32 %v1367_v11, 0.0  ;;  %v1240_v7 = vadd.f32 %v3615_v2, %v1191_v38 }
 0x2d0   :  { %v1421_v13 = vpack.c.bf16 %v1405_v55, %v1405_v55  ;;  %v1284_v55 = vadd.f32 %v3672_v0, %v1235_v29  ;;  %v1201_v29 = vadd.f32 %v3582_v63, %v3625_v61 }
 0x2d2   :  { %v1534_v6 = vunpack.c.l.b16 %v1421_v13  ;;  %v1288_v13 = vpop.f32.mrf.mxu3  ;;  %v1333_v62 = vadd.f32 %v1332_v43, %v1284_v55 }
 0x2d3   :  { %v1369_v44 = vpop.f32.mrf.mxu2 }
 0x2d4   :  { %v3682_v18 = vpack.c.b16 %v1534_v6, %v1533_v50  ;;  %v1370_v12 = vadd.f32 %v1369_v44, %v1321_v17  ;;  %v1337_v6 = vpop.f32.mrf.mxu1 }
 0x2d6   :  { %2241 = vmatmul.bf16.vlgmr.msrb.gmra.mxu1 %v3682_v18  ;;  %v1406_v20 = vmax.f32 %v1370_v12, 0.0  ;;  %v1287_v12 = vadd.f32 %v1286_v52, %v3613_v16 }
 0x2d8   :  { %v1422_v22 = vpack.c.bf16 %v1406_v20, %v1406_v20 }
 0x2da   :  { %v1535_v30 = vunpack.c.l.b16 %v1422_v22 }
 0x2db   :  { %v1371_v23 = vpop.f32.mrf.mxu2 }
 0x2dc   :  { %v1372_v27 = vadd.f32 %v1371_v23, %v1323_v15  ;;  %v1291_v15 = vpop.f32.mrf.mxu3  ;;  %v1336_v23 = vadd.f32 %v1335_v56, %v1287_v12 }
 0x2dd   :  { %v1292_v43 = vadd.f32 %v1291_v15, %v3620_v40 }
 0x2de   :  { %v1407_v26 = vmax.f32 %v1372_v27, 0.0  ;;  %v1340_v27 = vpop.f32.mrf.mxu1 }
 0x2e0   :  { %v1423_v28 = vpack.c.bf16 %v1407_v26, %v1407_v26  ;;  %v1289_v26 = vadd.f32 %v1288_v13, %v1240_v7 }
 0x2e2   :  { %v1536_v1 = vunpack.c.l.b16 %v1423_v28  ;;  %v1338_v28 = vadd.f32 %v1337_v6, %v1289_v26 }
 0x2e3   :  { %v1374_v35 = vpop.f32.mrf.mxu2 }
 0x2e4   :  { %v3690_v36 = vpack.c.b16 %v1536_v1, %v1535_v30  ;;  %v1375_v37 = vadd.f32 %v1374_v35, %v1326_v31  ;;  %v1293_v1 = vpop.f32.mrf.mxu3 }
 0x2e6   :  { %2246 = vmatmul.bf16.gmra.mxu1 %v3690_v36  ;;  %v1408_v34 = vmax.f32 %v1375_v37, 0.0  ;;  %v1342_v31 = vpop.f32.mrf.mxu1  ;;  %v1196_v37 = vadd.f32 %v3582_v63, %v3617_v32 }
 0x2e8   :  { %v1424_v25 = vpack.c.bf16 %v1408_v34, %v1408_v34  ;;  %v1341_v34 = vadd.f32 %v1340_v27, %v1292_v43 }
 0x2ea   :  { %v1537_v54 = vunpack.c.l.b16 %v1424_v25 }
 0x2eb   :  { %v1376_v39 = vpop.f32.mrf.mxu2 }
 0x2ec   :  { %v1377_v47 = vadd.f32 %v1376_v39, %v1328_v41 }
 0x2ee   :  { %v1409_v51 = vmax.f32 %v1377_v47, 0.0  ;;  %v1245_v47 = vadd.f32 %v3622_v48, %v1196_v37 }
 0x2f0   :  { %v1425_v53 = vpack.c.bf16 %v1409_v51, %v1409_v51  ;;  %v1296_v51 = vpop.f32.mrf.mxu3  ;;  %v1294_v52 = vadd.f32 %v1293_v1, %v1245_v47  ;;  %v3282_v47 = vld [vmem:[#allocation2 + $0x20] sm:$0xff] }
 0x2f2   :  { %v1538_v46 = vunpack.c.l.b16 %v1425_v53  ;;  %v1345_v53 = vpop.f32.mrf.mxu1  ;;  %v1343_v56 = vadd.f32 %v1342_v31, %v1294_v52  ;;  %v3221_v52 = vld [vmem:[#allocation8 + $0x58] sm:$0xff] }
 0x2f3   :  { %v1379_v57 = vpop.f32.mrf.mxu2 }
 0x2f4   :  { %v3698_v11 = vpack.c.b16 %v1538_v46, %v1537_v54  ;;  %v1380_v8 = vadd.f32 %v1379_v57, %v1331_v4 }
 0x2f6   :  { %2251 = vmatmul.bf16.gmra.mxu1 %v3698_v11  ;;  %v1410_v50 = vmax.f32 %v1380_v8, 0.0  ;;  %v1297_v8 = vadd.f32 %v1296_v51, %v3627_v5  ;;  %v3284_v51 = vld [vmem:[#allocation2 + $0x30] sm:$0xff] }
 0x2f8   :  { %v1426_v44 = vpack.c.bf16 %v1410_v50, %v1410_v50  ;;  %v1298_v40 = vpop.f32.mrf.mxu3  ;;  %v1346_v50 = vadd.f32 %v1345_v53, %v1297_v8  ;;  %v3220_v53 = vld [vmem:[#allocation8 + $0x50] sm:$0xff] }
 0x2fa   :  { %v1539_v59 = vunpack.c.l.b16 %v1426_v44  ;;  %v1347_v13 = vpop.f32.mrf.mxu1 }
 0x2fb   :  { %v1381_v14 = vpop.f32.mrf.mxu2 }
 0x2fc   :  { %v1382_v42 = vadd.f32 %v1381_v14, %v1333_v62  ;;  %v1250_v14 = vadd.f32 %v3629_v10, %v1201_v29 }
 0x2fe   :  { %v1411_v17 = vmax.f32 %v1382_v42, 0.0  ;;  %v1299_v44 = vadd.f32 %v1298_v40, %v1250_v14 }
 0x300   :  { %v1427_v49 = vpack.c.bf16 %v1411_v17, %v1411_v17  ;;  %v1348_v17 = vadd.f32 %v1347_v13, %v1299_v44  ;;  %v1301_v38 = vpop.f32.mrf.mxu3  ;;  %v3287_v13 = vld [vmem:[#allocation2 + $0x48] sm:$0xff] }
 0x302   :  { %v1540_v19 = vunpack.c.l.b16 %v1427_v49 }
 0x303   :  { %v1384_v20 = vpop.f32.mrf.mxu2 }
 0x304   :  { %v3706_v0 = vpack.c.b16 %v1540_v19, %v1539_v59  ;;  %v1385_v22 = vadd.f32 %v1384_v20, %v1336_v23  ;;  %v1350_v19 = vpop.f32.mrf.mxu1  ;;  %v1206_v20 = vadd.f32 %v3582_v63, %v3666_v3  ;;  %v1302_v23 = vadd.f32 %v1301_v38, %v3632_v24 }
 0x306   :  { %2256 = vmatmul.bf16.gmra.mxu1 %v3706_v0  ;;  %v1412_v58 = vmax.f32 %v1385_v22, 0.0  ;;  %v1351_v22 = vadd.f32 %v1350_v19, %v1302_v23 }
 0x308   :  { %v1428_v16 = vpack.c.bf16 %v1412_v58, %v1412_v58  ;;  %v1255_v58 = vadd.f32 %v3634_v33, %v1206_v20  ;;  %v3278_v33 = vld [vmem:[#allocation2] sm:$0xff] }
 0x30a   :  { %v1541_v45 = vunpack.c.l.b16 %v1428_v16 }
 0x30b   :  { %v1386_v30 = vpop.f32.mrf.mxu2 }
 0x30c   :  { %v1387_v60 = vadd.f32 %v1386_v30, %v1338_v28  ;;  %v1303_v28 = vpop.f32.mrf.mxu3 }
 0x30d   :  { %v1304_v1 = vadd.f32 %v1303_v28, %v1255_v58  ;;  %v3290_v28 = vld [vmem:[#allocation2 + $0x60] sm:$0xff] }
 0x30e   :  { %v1413_v35 = vmax.f32 %v1387_v60, 0.0  ;;  %v1352_v60 = vpop.f32.mrf.mxu1 }
 0x30f   :  { %v1353_v16 = vadd.f32 %v1352_v60, %v1304_v1  ;;  %v3247_v60 = vld [vmem:[#allocation8 + $0x128] sm:$0xff] }
 0x310   :  { %v1429_v9 = vpack.c.bf16 %v1413_v35, %v1413_v35 }
 0x312   :  { %v1542_v2 = vunpack.c.l.b16 %v1429_v9 }
 0x313   :  { %v1389_v41 = vpop.f32.mrf.mxu2 }
 0x314   :  { %v1553_v39 = vpack.c.b16 %v1542_v2, %v1541_v45  ;;  %v1390_v25 = vadd.f32 %v1389_v41, %v1341_v34  ;;  %v3279_v2 = vld [vmem:[#allocation2 + $0x8] sm:$0xff]  ;;  %v3280_v41 = vld [vmem:[#allocation2 + $0x10] sm:$0xff]  ;;  %v3281_v34 = vld [vmem:[#allocation2 + $0x18] sm:$0xff] }
 0x316   :  { %2261 = vmatmul.bf16.gmra.mxu1 %v1553_v39  ;;  %v1414_v21 = vmax.f32 %v1390_v25, 0.0  ;;  %v3283_v25 = vld [vmem:[#allocation2 + $0x28] sm:$0xff] }
 0x318   :  { %v1430_v57 = vpack.c.bf16 %v1414_v21, %v1414_v21  ;;  %v3218_v21 = vld [vmem:[#allocation8 + $0x40] sm:$0xff] }
 0x31a   :  { %v1543_v55 = vunpack.c.l.b16 %v1430_v57 }
 0x31b   :  { %v1391_v54 = vpop.f32.mrf.mxu2 }
 0x31c   :  { %v1392_v46 = vadd.f32 %v1391_v54, %v1343_v56  ;;  %v3219_v56 = vld [vmem:[#allocation8 + $0x48] sm:$0xff]  ;;  %v3285_v54 = vld [vmem:[#allocation2 + $0x38] sm:$0xff] }
 0x31e   :  { %v1415_v32 = vmax.f32 %v1392_v46, 0.0  ;;  %v3286_v46 = vld [vmem:[#allocation2 + $0x40] sm:$0xff] }
 0x320   :  { %v1431_v4 = vpack.c.bf16 %v1415_v32, %v1415_v32 }
 0x322   :  { %v1544_v48 = vunpack.c.l.b16 %v1431_v4 }
 0x323   :  { %v1394_v62 = vpop.f32.mrf.mxu2 }
 0x324   :  { %v1554_v6 = vpack.c.b16 %v1544_v48, %v1543_v55  ;;  %v1395_v42 = vadd.f32 %v1394_v62, %v1346_v50  ;;  %v3248_v55 = vld [vmem:[#allocation8 + $0x130] sm:$0xff] }
 0x326   :  { %2266 = vmatmul.bf16.gmra.mxu1 %v1554_v6  ;;  %v1416_v49 = vmax.f32 %v1395_v42, 0.0 }
 0x328   :  { %v1432_v61 = vpack.c.bf16 %v1416_v49, %v1416_v49 }
 0x32a   :  { %v1545_v27 = vunpack.c.l.b16 %v1432_v61 }
 0x32b   :  { %v1396_v12 = vpop.f32.mrf.mxu2 }
 0x32c   :  { %v1397_v59 = vadd.f32 %v1396_v12, %v1348_v17  ;;  %v3288_v17 = vld [vmem:[#allocation2 + $0x50] sm:$0xff] }
 0x32e   :  { %v1417_v15 = vmax.f32 %v1397_v59, 0.0 }
 0x330   :  { %v1433_v5 = vpack.c.bf16 %v1417_v15, %v1417_v15 }
 0x332   :  { %v1546_v7 = vunpack.c.l.b16 %v1433_v5  ;;  %v3289_v5 = vld [vmem:[#allocation2 + $0x58] sm:$0xff] }
 0x333   :  { %v1399_v10 = vpop.f32.mrf.mxu2 }
 0x334   :  { %v1555_v26 = vpack.c.b16 %v1546_v7, %v1545_v27  ;;  %v1400_v30 = vadd.f32 %v1399_v10, %v1351_v22 }
 0x336   :  { %2271 = vmatmul.bf16.gmra.mxu1 %v1555_v26  ;;  %v1418_v35 = vmax.f32 %v1400_v30, 0.0 }
 0x338   :  { %v1434_v37 = vpack.c.bf16 %v1418_v35, %v1418_v35 }
 0x33a   :  { %v1547_v24 = vunpack.c.l.b16 %v1434_v37  ;;  %v3291_v37 = vld [vmem:[#allocation2 + $0x68] sm:$0xff] }
 0x33b   :  { %v1401_v31 = vpop.f32.mrf.mxu2 }
 0x33c   :  { %v1402_v9 = vadd.f32 %v1401_v31, %v1353_v16 }
 0x33e   :  { %v1419_v63 = vmax.f32 %v1402_v9, 0.0 }
 0x340   :  { %v1435_v3 = vpack.c.bf16 %v1419_v63, %v1419_v63 }
 0x342   :  { %v1548_v43 = vunpack.c.l.b16 %v1435_v3  ;;  %v3233_v3 = vld [vmem:[#allocation8 + $0xb8] sm:$0xff] }
 0x343   :  { %2331 = vmatpush.bf16.msra.mxu1 %v3233_v3 }
 0x344   :  { %v1556_v45 = vpack.c.b16 %v1548_v43, %v1547_v24  ;;  %v3232_v43 = vld [vmem:[#allocation8 + $0xb0] sm:$0xff] }
 0x346   :  { %1565 = vmatpush.bf16.msrb.mxu3 %v1556_v45  ;;  %2276 = vmatmul.bf16.gmra.mxu1 %v1556_v45  ;;  %v3231_v45 = vld [vmem:[#allocation8 + $0xa8] sm:$0xff] }
 0x347   :  { %2332 = vmatpush.bf16.msra.mxu1 %v3232_v43 }
 0x34a   :  { %1566 = vmatpush.bf16.msrb.mxu3 %v1555_v26 }
 0x34b   :  { %2333 = vmatpush.bf16.msra.mxu1 %v3231_v45 }
 0x34e   :  { %1567 = vmatpush.bf16.msrb.mxu3 %v1554_v6 }
 0x352   :  { %1568 = vmatpush.bf16.msrb.mxu3 %v1553_v39  ;;  %v3225_v39 = vld [vmem:[#allocation8 + $0x78] sm:$0xff] }
 0x353   :  { %2282 = vmatpush.bf16.msrb.mxu2 %v3225_v39  ;;  %v3292_v39 = vld [vmem:[#allocation2 + $0x70] sm:$0xff] }
 0x356   :  { %1569 = vmatpush.bf16.msrb.mxu3 %v3706_v0  ;;  %v3249_v0 = vld [vmem:[#allocation8 + $0x138] sm:$0xff] }
 0x357   :  { %2429 = vmatpush.bf16.msrb.mxu0 %v3249_v0 }
 0x35a   :  { %1570 = vmatpush.bf16.msrb.mxu3 %v3698_v11  ;;  %v3224_v11 = vld [vmem:[#allocation8 + $0x70] sm:$0xff] }
 0x35b   :  { %2283 = vmatpush.bf16.msrb.mxu2 %v3224_v11  ;;  %2430 = vmatpush.bf16.msrb.mxu0 %v3248_v55  ;;  %v3229_v11 = vld [vmem:[#allocation8 + $0x98] sm:$0xff] }
 0x35e   :  { %1571 = vmatpush.bf16.msrb.mxu3 %v3690_v36  ;;  %v3223_v36 = vld [vmem:[#allocation8 + $0x68] sm:$0xff] }
 0x35f   :  { %2284 = vmatpush.bf16.msrb.mxu2 %v3223_v36  ;;  %2431 = vmatpush.bf16.msrb.mxu0 %v3247_v60 }
 0x362   :  { %1572 = vmatpush.bf16.msrb.mxu3 %v3682_v18  ;;  %v3222_v18 = vld [vmem:[#allocation8 + $0x60] sm:$0xff] }
 0x363   :  { %2285 = vmatpush.bf16.msrb.mxu2 %v3222_v18  ;;  %v3228_v18 = vld [vmem:[#allocation8 + $0x90] sm:$0xff] }
 0x365   :  { %1573 = vmatmul.bf16.vlgmr.msrb.gmra.mxu3 %v3278_v33 }
 0x367   :  { %2286 = vmatpush.bf16.msrb.mxu2 %v3221_v52 }
 0x36b   :  { %2287 = vmatpush.bf16.msrb.mxu2 %v3220_v53 }
 0x36f   :  { %2288 = vmatpush.bf16.msrb.mxu2 %v3219_v56 }
 0x373   :  { %2289 = vmatpush.bf16.msrb.mxu2 %v3218_v21  ;;  %v3226_v21 = vld [vmem:[#allocation8 + $0x80] sm:$0xff] }
 0x375   :  { %1578 = vmatmul.bf16.gmra.mxu3 %v3279_v2 }
 0x385   :  { %1583 = vmatmul.bf16.gmra.mxu3 %v3280_v41 }
 0x395   :  { %1588 = vmatmul.bf16.gmra.mxu3 %v3281_v34  ;;  %v3230_v34 = vld [vmem:[#allocation8 + $0xa0] sm:$0xff] }
 0x396   :  { %2334 = vmatpush.bf16.msra.mxu1 %v3230_v34 }
 0x39a   :  { %2335 = vmatpush.bf16.msra.mxu1 %v3229_v11 }
 0x39e   :  { %2336 = vmatpush.bf16.msra.mxu1 %v3228_v18 }
 0x3a5   :  { %1593 = vmatmul.bf16.gmra.mxu3 %v3282_v47 }
 0x3b5   :  { %1598 = vmatmul.bf16.gmra.mxu3 %v3283_v25 }
 0x3c5   :  { %1603 = vmatmul.bf16.gmra.mxu3 %v3284_v51  ;;  %v3227_v51 = vld [vmem:[#allocation8 + $0x88] sm:$0xff] }
 0x3c6   :  { %2337 = vmatpush.bf16.msra.mxu1 %v3227_v51 }
 0x3ca   :  { %2338 = vmatpush.bf16.msra.mxu1 %v3226_v21 }
 0x3d5   :  { %1608 = vmatmul.bf16.gmra.mxu3 %v3285_v54 }
 0x3e5   :  { %1613 = vmatmul.bf16.gmra.mxu3 %v3286_v46 }
 0x3e8   :  { %v1574_v57 = vpop.f32.mrf.mxu3 }
 0x3e9   :  { %v1734_v32 = vpack.c.bf16 %v1574_v57, %v1574_v57  ;;  %v3293_v57 = vld [vmem:[#allocation2 + $0x78] sm:$0xff] }
 0x3eb   :  { %v1814_v29 = vunpack.c.l.b16 %v1734_v32 }
 0x3f0   :  { %v1576_v4 = vpop.f32.mrf.mxu3 }
 0x3f1   :  { %v1735_v40 = vpack.c.bf16 %v1576_v4, %v1576_v4 }
 0x3f3   :  { %v1815_v8 = vunpack.c.l.b16 %v1735_v40  ;;  %v2242_v40 = vpop.f32.mrf.mxu1 }
 0x3f5   :  { %v1830_v48 = vpack.c.b16 %v1815_v8, %v1814_v29  ;;  %1618 = vmatmul.bf16.gmra.mxu3 %v3287_v13 }
 0x3f7   :  { %2290 = vmatmul.bf16.vlgmr.msrb.gmra.mxu2 %v1830_v48 }
 0x3f8   :  { %v1579_v62 = vpop.f32.mrf.mxu3 }
 0x3f9   :  { %v1736_v50 = vpack.c.bf16 %v1579_v62, %v1579_v62  ;;  %v3246_v62 = vld [vmem:[#allocation8 + $0x120] sm:$0xff] }
 0x3fa   :  { %2432 = vmatpush.bf16.msrb.mxu0 %v3246_v62 }
 0x3fb   :  { %v1816_v42 = vunpack.c.l.b16 %v1736_v50  ;;  %v3726_v50 = vpop.f32.mrf.mxu1 }
 0x400   :  { %v1581_v6 = vpop.f32.mrf.mxu3 }
 0x401   :  { %v1737_v14 = vpack.c.bf16 %v1581_v6, %v1581_v6  ;;  %v3294_v6 = vld [vmem:[#allocation2 + $0x80] sm:$0xff] }
 0x403   :  { %v1817_v44 = vunpack.c.l.b16 %v1737_v14 }
 0x405   :  { %1623 = vmatmul.bf16.gmra.mxu3 %v3288_v17  ;;  %v1831_v49 = vpack.c.b16 %v1817_v44, %v1816_v42  ;;  %v2247_v44 = vpop.f32.mrf.mxu1 }
 0x407   :  { %2295 = vmatmul.bf16.gmra.mxu2 %v1831_v49 }
 0x408   :  { %v1584_v38 = vpop.f32.mrf.mxu3 }
 0x409   :  { %v1738_v12 = vpack.c.bf16 %v1584_v38, %v1584_v38 }
 0x40b   :  { %v1818_v61 = vunpack.c.l.b16 %v1738_v12 }
 0x410   :  { %v1586_v59 = vpop.f32.mrf.mxu3 }
 0x411   :  { %v1739_v19 = vpack.c.bf16 %v1586_v59, %v1586_v59 }
 0x413   :  { %v1819_v15 = vunpack.c.l.b16 %v1739_v19  ;;  %v3731_v19 = vld [vmem:[%s3821_s5] ss:$0 sm:$0xff]  ;;  %s3470_s5 = smov [#allocation10]  }
 0x414   :  { %s2617_s22 = sshll.u32 %s3470_s5, 4  ;;  %s2618_s22 = int_to_ptr.vmem [resolvable:$true] %s2617_s22 }
 0x415   :  { %1628 = vmatmul.bf16.gmra.mxu3 %v3289_v5  ;;  %v1832_v20 = vpack.c.b16 %v1819_v15, %v1818_v61  ;;  %v3295_v15 = vld [vmem:[#allocation2 + $0x88] sm:$0xff]  ;;  %v3733_v5 = vpop.f32.mrf.mxu1 }
 0x417   :  { %2300 = vmatmul.bf16.gmra.mxu2 %v1832_v20 }
 0x418   :  { %v1589_v23 = vpop.f32.mrf.mxu3 }
 0x419   :  { %v1740_v27 = vpack.c.bf16 %v1589_v23, %v1589_v23  ;;  %v2243_v23 = vadd.f32 %v3731_v19, %v2242_v40 }
 0x41b   :  { %v1820_v22 = vunpack.c.l.b16 %v1740_v27 }
 0x420   :  { %v1591_v7 = vpop.f32.mrf.mxu3 }
 0x421   :  { %v1741_v10 = vpack.c.bf16 %v1591_v7, %v1591_v7 }
 0x423   :  { %v1821_v26 = vunpack.c.l.b16 %v1741_v10 }
 0x425   :  { %1633 = vmatmul.bf16.gmra.mxu3 %v3290_v28  ;;  %v1833_v58 = vpack.c.b16 %v1821_v26, %v1820_v22  ;;  %v2252_v28 = vpop.f32.mrf.mxu1 }
 0x427   :  { %2305 = vmatmul.bf16.gmra.mxu2 %v1833_v58 }
 0x428   :  { %v1594_v30 = vpop.f32.mrf.mxu3 }
 0x429   :  { %v1742_v1 = vpack.c.bf16 %v1594_v30, %v1594_v30 }
 0x42b   :  { %v1822_v31 = vunpack.c.l.b16 %v1742_v1  ;;  %v3296_v1 = vld [vmem:[#allocation2 + $0x90] sm:$0xff] }
 0x430   :  { %v1596_v16 = vpop.f32.mrf.mxu3 }
 0x431   :  { %v1743_v35 = vpack.c.bf16 %v1596_v16, %v1596_v16 }
 0x433   :  { %v1823_v9 = vunpack.c.l.b16 %v1743_v35 }
 0x435   :  { %1638 = vmatmul.bf16.gmra.mxu3 %v3291_v37  ;;  %v1834_v63 = vpack.c.b16 %v1823_v9, %v1822_v31  ;;  %v2248_v31 = vadd.f32 %v3731_v19, %v2247_v44  ;;  %v3299_v44 = vld [vmem:[#allocation2 + $0xa8] sm:$0xff] }
 0x437   :  { %2310 = vmatmul.bf16.gmra.mxu2 %v1834_v63  ;;  %v3743_v63 = vpop.f32.mrf.mxu1 }
 0x438   :  { %v1599_v24 = vpop.f32.mrf.mxu3 }
 0x439   :  { %v1744_v33 = vpack.c.bf16 %v1599_v24, %v1599_v24 }
 0x43b   :  { %v1824_v47 = vunpack.c.l.b16 %v1744_v33 }
 0x440   :  { %v1601_v2 = vpop.f32.mrf.mxu3 }
 0x441   :  { %v1745_v41 = vpack.c.bf16 %v1601_v2, %v1601_v2 }
 0x443   :  { %v1825_v25 = vunpack.c.l.b16 %v1745_v41  ;;  %v3297_v41 = vld [vmem:[#allocation2 + $0x98] sm:$0xff] }
 0x445   :  { %1643 = vmatmul.bf16.gmra.mxu3 %v3292_v39  ;;  %v1835_v0 = vpack.c.b16 %v1825_v25, %v1824_v47  ;;  %v2257_v47 = vpop.f32.mrf.mxu1  ;;  %v2253_v39 = vadd.f32 %v3731_v19, %v2252_v28 }
 0x447   :  { %2315 = vmatmul.bf16.gmra.mxu2 %v1835_v0 }
 0x448   :  { %v1604_v36 = vpop.f32.mrf.mxu3 }
 0x449   :  { %v1746_v52 = vpack.c.bf16 %v1604_v36, %v1604_v36  ;;  %v3245_v36 = vld [vmem:[#allocation8 + $0x118] sm:$0xff] }
 0x44a   :  { %2433 = vmatpush.bf16.msrb.mxu0 %v3245_v36 }
 0x44b   :  { %v1826_v54 = vunpack.c.l.b16 %v1746_v52 }
 0x44d   :  { %v3750_v51 = vpop.f32.mrf.mxu1 }
 0x450   :  { %v1606_v53 = vpop.f32.mrf.mxu3 }
 0x451   :  { %v1747_v56 = vpack.c.bf16 %v1606_v53, %v1606_v53 }
 0x453   :  { %v1827_v46 = vunpack.c.l.b16 %v1747_v56 }
 0x455   :  { %1648 = vmatmul.bf16.gmra.mxu3 %v3293_v57  ;;  %v1836_v32 = vpack.c.b16 %v1827_v46, %v1826_v54  ;;  %v3298_v46 = vld [vmem:[#allocation2 + $0xa0] sm:$0xff]  ;;  %v2262_v40 = vpop.f32.mrf.mxu1 }
 0x457   :  { %2320 = vmatmul.bf16.gmra.mxu2 %v1836_v32 }
 0x458   :  { %v1609_v4 = vpop.f32.mrf.mxu3 }
 0x459   :  { %v1748_v29 = vpack.c.bf16 %v1609_v4, %v1609_v4  ;;  %v2258_v4 = vadd.f32 %v3731_v19, %v2257_v47 }
 0x45b   :  { %v1828_v48 = vunpack.c.l.b16 %v1748_v29 }
 0x460   :  { %v1611_v8 = vpop.f32.mrf.mxu3 }
 0x461   :  { %v1749_v55 = vpack.c.bf16 %v1611_v8, %v1611_v8 }
 0x463   :  { %v1829_v13 = vunpack.c.l.b16 %v1749_v55 }
 0x465   :  { %1653 = vmatmul.bf16.gmra.mxu3 %v3294_v6  ;;  %v1837_v14 = vpack.c.b16 %v1829_v13, %v1828_v48 }
 0x467   :  { %2325 = vmatmul.bf16.gmra.mxu2 %v1837_v14 }
 0x468   :  { %v1614_v42 = vpop.f32.mrf.mxu3 }
 0x469   :  { %v1750_v17 = vpack.c.bf16 %v1614_v42, %v1614_v42  ;;  %v2264_v42 = vpop.f32.mrf.mxu1 }
 0x46b   :  { %v1862_v12 = vunpack.c.l.b16 %v1750_v17 }
 0x470   :  { %v1616_v49 = vpop.f32.mrf.mxu3 }
 0x471   :  { %v1751_v38 = vpack.c.bf16 %v1616_v49, %v1616_v49  ;;  %v3241_v49 = vld [vmem:[#allocation8 + $0xf8] sm:$0xff] }
 0x472   :  { %2380 = vmatpush.bf16.msra.mxu2 %v3241_v49 }
 0x473   :  { %v1863_v59 = vunpack.c.l.b16 %v1751_v38 }
 0x475   :  { %v1878_v61 = vpack.c.b16 %v1863_v59, %v1862_v12  ;;  %1658 = vmatmul.bf16.gmra.mxu3 %v3295_v15  ;;  %v2263_v12 = vadd.f32 %v3731_v19, %v2262_v40 }
 0x477   :  { %2339 = vmatmul.bf16.vlgmr.msra.gmra.mxu1 %v1878_v61  ;;  %v3240_v61 = vld [vmem:[#allocation8 + $0xf0] sm:$0xff] }
 0x478   :  { %v1619_v20 = vpop.f32.mrf.mxu3  ;;  %2381 = vmatpush.bf16.msra.mxu2 %v3240_v61 }
 0x479   :  { %v1752_v10 = vpack.c.bf16 %v1619_v20, %v1619_v20  ;;  %v2267_v20 = vpop.f32.mrf.mxu1 }
 0x47a   :  { %v2291_v27 = vpop.f32.mrf.mxu2 }
 0x47b   :  { %v3736_v7 = vadd.f32 %v2291_v27, %v2243_v23  ;;  %v1864_v30 = vunpack.c.l.b16 %v1752_v10  ;;  %v3239_v23 = vld [vmem:[#allocation8 + $0xe8] sm:$0xff] }
 0x47c   :  { %2382 = vmatpush.bf16.msra.mxu2 %v3239_v23 }
 0x480   :  { %v1621_v22 = vpop.f32.mrf.mxu3 }
 0x481   :  { %v1753_v26 = vpack.c.bf16 %v1621_v22, %v1621_v22  ;;  %v2265_v22 = vadd.f32 %v3731_v19, %v2264_v42 }
 0x482   :  { %v3738_v58 = vpop.f32.mrf.mxu2 }
 0x483   :  { %v1865_v60 = vunpack.c.l.b16 %v1753_v26 }
 0x485   :  { %1663 = vmatmul.bf16.gmra.mxu3 %v3296_v1  ;;  %v1879_v16 = vpack.c.b16 %v1865_v60, %v1864_v30  ;;  %v3238_v30 = vld [vmem:[#allocation8 + $0xe0] sm:$0xff] }
 0x486   :  { %2383 = vmatpush.bf16.msra.mxu2 %v3238_v30 }
 0x487   :  { %2344 = vmatmul.bf16.gmra.mxu1 %v1879_v16 }
 0x488   :  { %v1624_v35 = vpop.f32.mrf.mxu3 }
 0x489   :  { %v1754_v3 = vpack.c.bf16 %v1624_v35, %v1624_v35  ;;  %v3300_v35 = vld [vmem:[#allocation2 + $0xb0] sm:$0xff] }
 0x48a   :  { %v2296_v9 = vpop.f32.mrf.mxu2 }
 0x48b   :  { %v3741_v37 = vadd.f32 %v2296_v9, %v2248_v31  ;;  %v1866_v33 = vunpack.c.l.b16 %v1754_v3  ;;  %v3237_v9 = vld [vmem:[#allocation8 + $0xd8] sm:$0xff]  ;;  %v2269_v3 = vpop.f32.mrf.mxu1 }
 0x48c   :  { %2384 = vmatpush.bf16.msra.mxu2 %v3237_v9 }
 0x490   :  { %v1626_v24 = vpop.f32.mrf.mxu3 }
 0x491   :  { %v1755_v43 = vpack.c.bf16 %v1626_v24, %v1626_v24 }
 0x492   :  { %v3745_v45 = vpop.f32.mrf.mxu2 }
 0x493   :  { %v1867_v2 = vunpack.c.l.b16 %v1755_v43  ;;  %v2268_v43 = vadd.f32 %v3731_v19, %v2267_v20  ;;  %v2272_v36 = vpop.f32.mrf.mxu1 }
 0x494   :  { %v2273_v40 = vadd.f32 %v3731_v19, %v2272_v36 }
 0x495   :  { %1668 = vmatmul.bf16.gmra.mxu3 %v3297_v41  ;;  %v1880_v34 = vpack.c.b16 %v1867_v2, %v1866_v33  ;;  %v3236_v2 = vld [vmem:[#allocation8 + $0xd0] sm:$0xff] }
 0x496   :  { %2385 = vmatpush.bf16.msra.mxu2 %v3236_v2  ;;  %v3304_v2 = vld [vmem:[#allocation2 + $0xd0] sm:$0xff] }
 0x497   :  { %2349 = vmatmul.bf16.gmra.mxu1 %v1880_v34  ;;  %v3235_v34 = vld [vmem:[#allocation8 + $0xc8] sm:$0xff] }
 0x498   :  { %v1629_v25 = vpop.f32.mrf.mxu3 }
 0x499   :  { %v1756_v18 = vpack.c.bf16 %v1629_v25, %v1629_v25 }
 0x49a   :  { %v2301_v0 = vpop.f32.mrf.mxu2  ;;  %2386 = vmatpush.bf16.msra.mxu2 %v3235_v34 }
 0x49b   :  { %v3748_v11 = vadd.f32 %v2301_v0, %v2253_v39  ;;  %v1868_v21 = vunpack.c.l.b16 %v1756_v18  ;;  %v2270_v39 = vadd.f32 %v3731_v19, %v2269_v3 }
 0x4a0   :  { %v1631_v52 = vpop.f32.mrf.mxu3 }
 0x4a1   :  { %v1757_v53 = vpack.c.bf16 %v1631_v52, %v1631_v52  ;;  %v3234_v52 = vld [vmem:[#allocation8 + $0xc0] sm:$0xff] }
 0x4a2   :  { %v3752_v56 = vpop.f32.mrf.mxu2  ;;  %2387 = vmatpush.bf16.msra.mxu2 %v3234_v52 }
 0x4a3   :  { %v1869_v54 = vunpack.c.l.b16 %v1757_v53 }
 0x4a5   :  { %1673 = vmatmul.bf16.gmra.mxu3 %v3298_v46  ;;  %v1881_v57 = vpack.c.b16 %v1869_v54, %v1868_v21  ;;  %v3301_v46 = vld [vmem:[#allocation2 + $0xb8] sm:$0xff] }
 0x4a7   :  { %2354 = vmatmul.bf16.gmra.mxu1 %v1881_v57 }
 0x4a8   :  { %v1634_v32 = vpop.f32.mrf.mxu3 }
 0x4a9   :  { %v1758_v55 = vpack.c.bf16 %v1634_v32, %v1634_v32  ;;  %v3244_v32 = vld [vmem:[#allocation8 + $0x110] sm:$0xff] }
 0x4aa   :  { %v2306_v29 = vpop.f32.mrf.mxu2  ;;  %2434 = vmatpush.bf16.msrb.mxu0 %v3244_v32 }
 0x4ab   :  { %v3755_v8 = vadd.f32 %v2306_v29, %v2258_v4  ;;  %v1870_v6 = vunpack.c.l.b16 %v1758_v55 }
 0x4b0   :  { %v1636_v48 = vpop.f32.mrf.mxu3 }
 0x4b1   :  { %v1759_v13 = vpack.c.bf16 %v1636_v48, %v1636_v48  ;;  %v2274_v48 = vpop.f32.mrf.mxu1 }
 0x4b2   :  { %v3757_v62 = vpop.f32.mrf.mxu2 }
 0x4b3   :  { %v1871_v14 = vunpack.c.l.b16 %v1759_v13 }
 0x4b5   :  { %1678 = vmatmul.bf16.gmra.mxu3 %v3299_v44  ;;  %v1882_v17 = vpack.c.b16 %v1871_v14, %v1870_v6  ;;  %v2275_v14 = vadd.f32 %v3731_v19, %v2274_v48  ;;  %v3306_v48 = vld [vmem:[#allocation2 + $0xe0] sm:$0xff] }
 0x4b7   :  { %2359 = vmatmul.bf16.gmra.mxu1 %v1882_v17 }
 0x4b8   :  { %v1639_v38 = vpop.f32.mrf.mxu3 }
 0x4b9   :  { %v1760_v27 = vpack.c.bf16 %v1639_v38, %v1639_v38  ;;  %v2277_v61 = vpop.f32.mrf.mxu1 }
 0x4ba   :  { %v2311_v59 = vpop.f32.mrf.mxu2  ;;  %v2278_v23 = vadd.f32 %v3731_v19, %v2277_v61 }
 0x4bb   :  { %v3760_v15 = vadd.f32 %v2311_v59, %v2263_v12  ;;  %v1872_v60 = vunpack.c.l.b16 %v1760_v27  ;;  %v3302_v12 = vld [vmem:[#allocation2 + $0xc0] sm:$0xff] }
 0x4c0   :  { %v1641_v10 = vpop.f32.mrf.mxu3 }
 0x4c1   :  { %v1761_v26 = vpack.c.bf16 %v1641_v10, %v1641_v10 }
 0x4c2   :  { %v2313_v28 = vpop.f32.mrf.mxu2 }
 0x4c3   :  { %v1873_v1 = vunpack.c.l.b16 %v1761_v26  ;;  %v3763_v16 = vadd.f32 %v2313_v28, %v2265_v22 }
 0x4c5   :  { %1683 = vmatmul.bf16.gmra.mxu3 %v3300_v35  ;;  %v1883_v31 = vpack.c.b16 %v1873_v1, %v1872_v60  ;;  %v3303_v35 = vld [vmem:[#allocation2 + $0xc8] sm:$0xff] }
 0x4c7   :  { %2364 = vmatmul.bf16.gmra.mxu1 %v1883_v31 }
 0x4c8   :  { %v1644_v24 = vpop.f32.mrf.mxu3 }
 0x4c9   :  { %v1762_v47 = vpack.c.bf16 %v1644_v24, %v1644_v24 }
 0x4ca   :  { %v2316_v33 = vpop.f32.mrf.mxu2 }
 0x4cb   :  { %v3766_v41 = vadd.f32 %v2316_v33, %v2268_v43  ;;  %v1874_v53 = vunpack.c.l.b16 %v1762_v47 }
 0x4d0   :  { %v1646_v25 = vpop.f32.mrf.mxu3 }
 0x4d1   :  { %v1763_v0 = vpack.c.bf16 %v1646_v25, %v1646_v25  ;;  %v3243_v25 = vld [vmem:[#allocation8 + $0x108] sm:$0xff] }
 0x4d2   :  { %v2318_v18 = vpop.f32.mrf.mxu2  ;;  %2435 = vmatpush.bf16.msrb.mxu0 %v3243_v25 }
 0x4d3   :  { %v1875_v21 = vunpack.c.l.b16 %v1763_v0  ;;  %v3769_v54 = vadd.f32 %v2318_v18, %v2270_v39 }
 0x4d5   :  { %1688 = vmatmul.bf16.gmra.mxu3 %v3301_v46  ;;  %v1884_v57 = vpack.c.b16 %v1875_v21, %v1874_v53  ;;  %v3305_v53 = vld [vmem:[#allocation2 + $0xd8] sm:$0xff] }
 0x4d7   :  { %2369 = vmatmul.bf16.gmra.mxu1 %v1884_v57 }
 0x4d8   :  { %v1649_v4 = vpop.f32.mrf.mxu3 }
 0x4d9   :  { %v1764_v13 = vpack.c.bf16 %v1649_v4, %v1649_v4 }
 0x4da   :  { %v2321_v29 = vpop.f32.mrf.mxu2 }
 0x4db   :  { %v3772_v55 = vadd.f32 %v2321_v29, %v2273_v40  ;;  %v1876_v17 = vunpack.c.l.b16 %v1764_v13 }
 0x4e0   :  { %v1651_v6 = vpop.f32.mrf.mxu3 }
 0x4e1   :  { %v1765_v42 = vpack.c.bf16 %v1651_v6, %v1651_v6 }
 0x4e2   :  { %v2323_v44 = vpop.f32.mrf.mxu2 }
 0x4e3   :  { %v1877_v49 = vunpack.c.l.b16 %v1765_v42  ;;  %v3775_v38 = vadd.f32 %v2323_v44, %v2275_v14 }
 0x4e5   :  { %1693 = vmatmul.bf16.gmra.mxu3 %v3302_v12  ;;  %v1885_v59 = vpack.c.b16 %v1877_v49, %v1876_v17 }
 0x4e7   :  { %2374 = vmatmul.bf16.gmra.mxu1 %v1885_v59  ;;  %v3307_v59 = vld [vmem:[#allocation2 + $0xe8] sm:$0xff] }
 0x4e8   :  { %v1654_v20 = vpop.f32.mrf.mxu3 }
 0x4e9   :  { %v1766_v22 = vpack.c.bf16 %v1654_v20, %v1654_v20 }
 0x4ea   :  { %v2326_v27 = vpop.f32.mrf.mxu2 }
 0x4eb   :  { %v3778_v10 = vadd.f32 %v2326_v27, %v2278_v23  ;;  %v1910_v30 = vunpack.c.l.b16 %v1766_v22 }
 0x4f0   :  { %v1656_v26 = vpop.f32.mrf.mxu3 }
 0x4f1   :  { %v1767_v28 = vpack.c.bf16 %v1656_v26, %v1656_v26 }
 0x4f3   :  { %v1911_v60 = vunpack.c.l.b16 %v1767_v28 }
 0x4f5   :  { %v1926_v1 = vpack.c.b16 %v1911_v60, %v1910_v30  ;;  %1698 = vmatmul.bf16.gmra.mxu3 %v3303_v35  ;;  %v3308_v30 = vld [vmem:[#allocation2 + $0xf0] sm:$0xff]  ;;  %v3242_v60 = vld [vmem:[#allocation8 + $0x100] sm:$0xff] }
 0x4f6   :  { %2436 = vmatpush.bf16.msrb.mxu0 %v3242_v60 }
 0x4f7   :  { %2388 = vmatmul.bf16.vlgmr.msra.gmra.mxu2 %v1926_v1 }
 0x4f8   :  { %v1659_v31 = vpop.f32.mrf.mxu3 }
 0x4f9   :  { %v1768_v9 = vpack.c.bf16 %v1659_v31, %v1659_v31 }
 0x4fb   :  { %v1912_v43 = vunpack.c.l.b16 %v1768_v9 }
 0x500   :  { %v1661_v3 = vpop.f32.mrf.mxu3 }
 0x501   :  { %v1769_v24 = vpack.c.bf16 %v1661_v3, %v1661_v3 }
 0x503   :  { %v1913_v33 = vunpack.c.l.b16 %v1769_v24 }
 0x505   :  { %1703 = vmatmul.bf16.gmra.mxu3 %v3304_v2  ;;  %v1927_v34 = vpack.c.b16 %v1913_v33, %v1912_v43  ;;  %v3309_v33 = vld [vmem:[#allocation2 + $0xf8] sm:$0xff] }
 0x507   :  { %2393 = vmatmul.bf16.gmra.mxu2 %v1927_v34 }
 0x508   :  { %v1664_v47 = vpop.f32.mrf.mxu3 }
 0x509   :  { %v1770_v39 = vpack.c.bf16 %v1664_v47, %v1664_v47 }
 0x50b   :  { %v1914_v18 = vunpack.c.l.b16 %v1770_v39 }
 0x510   :  { %v1666_v0 = vpop.f32.mrf.mxu3 }
 0x511   :  { %v1771_v36 = vpack.c.bf16 %v1666_v0, %v1666_v0 }
 0x513   :  { %v1915_v52 = vunpack.c.l.b16 %v1771_v36 }
 0x515   :  { %1708 = vmatmul.bf16.gmra.mxu3 %v3305_v53  ;;  %v1928_v21 = vpack.c.b16 %v1915_v52, %v1914_v18 }
 0x517   :  { %2398 = vmatmul.bf16.gmra.mxu2 %v1928_v21 }
 0x518   :  { %v1669_v46 = vpop.f32.mrf.mxu3 }
 0x519   :  { %v1772_v57 = vpack.c.bf16 %v1669_v46, %v1669_v46 }
 0x51b   :  { %v1916_v40 = vunpack.c.l.b16 %v1772_v57 }
 0x520   :  { %v1671_v32 = vpop.f32.mrf.mxu3 }
 0x521   :  { %v1773_v4 = vpack.c.bf16 %v1671_v32, %v1671_v32 }
 0x523   :  { %v1917_v29 = vunpack.c.l.b16 %v1773_v4 }
 0x525   :  { %1713 = vmatmul.bf16.gmra.mxu3 %v3306_v48  ;;  %v1929_v13 = vpack.c.b16 %v1917_v29, %v1916_v40 }
 0x527   :  { %2403 = vmatmul.bf16.gmra.mxu2 %v1929_v13 }
 0x528   :  { %v1674_v6 = vpop.f32.mrf.mxu3 }
 0x529   :  { %v1774_v14 = vpack.c.bf16 %v1674_v6, %v1674_v6 }
 0x52b   :  { %v1918_v17 = vunpack.c.l.b16 %v1774_v14 }
 0x530   :  { %v1676_v42 = vpop.f32.mrf.mxu3 }
 0x531   :  { %v1775_v44 = vpack.c.bf16 %v1676_v42, %v1676_v42 }
 0x533   :  { %v1919_v49 = vunpack.c.l.b16 %v1775_v44 }
 0x535   :  { %v1930_v12 = vpack.c.b16 %v1919_v49, %v1918_v17  ;;  %1718 = vmatmul.bf16.gmra.mxu3 %v3307_v59 }
 0x537   :  { %2408 = vmatmul.bf16.gmra.mxu2 %v1930_v12 }
 0x538   :  { %v1679_v61 = vpop.f32.mrf.mxu3 }
 0x539   :  { %v1776_v20 = vpack.c.bf16 %v1679_v61, %v1679_v61 }
 0x53b   :  { %v1920_v22 = vunpack.c.l.b16 %v1776_v20 }
 0x540   :  { %v1681_v23 = vpop.f32.mrf.mxu3 }
 0x541   :  { %v1777_v27 = vpack.c.bf16 %v1681_v23, %v1681_v23 }
 0x543   :  { %v1921_v26 = vunpack.c.l.b16 %v1777_v27 }
 0x545   :  { %v1931_v28 = vpack.c.b16 %v1921_v26, %v1920_v22  ;;  %1723 = vmatmul.bf16.gmra.mxu3 %v3308_v30 }
 0x547   :  { %2413 = vmatmul.bf16.gmra.mxu2 %v1931_v28 }
 0x548   :  { %v1684_v1 = vpop.f32.mrf.mxu3 }
 0x549   :  { %v1778_v35 = vpack.c.bf16 %v1684_v1, %v1684_v1 }
 0x54b   :  { %v1922_v3 = vunpack.c.l.b16 %v1778_v35 }
 0x550   :  { %v1686_v31 = vpop.f32.mrf.mxu3 }
 0x551   :  { %v1779_v9 = vpack.c.bf16 %v1686_v31, %v1686_v31 }
 0x553   :  { %v1923_v24 = vunpack.c.l.b16 %v1779_v9 }
 0x555   :  { %v1932_v43 = vpack.c.b16 %v1923_v24, %v1922_v3  ;;  %1728 = vmatmul.bf16.gmra.mxu3 %v3309_v33 }
 0x557   :  { %2418 = vmatmul.bf16.gmra.mxu2 %v1932_v43 }
 0x558   :  { %v1689_v2 = vpop.f32.mrf.mxu3 }
 0x559   :  { %v1780_v34 = vpack.c.bf16 %v1689_v2, %v1689_v2 }
 0x55b   :  { %v1924_v39 = vunpack.c.l.b16 %v1780_v34 }
 0x560   :  { %v1691_v47 = vpop.f32.mrf.mxu3 }
 0x561   :  { %v1781_v25 = vpack.c.bf16 %v1691_v47, %v1691_v47 }
 0x563   :  { %v1925_v0 = vunpack.c.l.b16 %v1781_v25 }
 0x565   :  { %v1933_v36 = vpack.c.b16 %v1925_v0, %v1924_v39  ;;  %v3780_v0 = vpop.f32.mrf.mxu1 }
 0x567   :  { %2423 = vmatmul.bf16.gmra.mxu2 %v1933_v36 }
 0x568   :  { %v1694_v18 = vpop.f32.mrf.mxu3 }
 0x569   :  { %v1782_v52 = vpack.c.bf16 %v1694_v18, %v1694_v18  ;;  %v3782_v18 = vpop.f32.mrf.mxu2 }
 0x56b   :  { %v1958_v46 = vunpack.c.l.b16 %v1782_v52 }
 0x570   :  { %v1696_v53 = vpop.f32.mrf.mxu3 }
 0x571   :  { %v1783_v21 = vpack.c.bf16 %v1696_v53, %v1696_v53  ;;  %v2340_v53 = vpop.f32.mrf.mxu1 }
 0x573   :  { %v1959_v57 = vunpack.c.l.b16 %v1783_v21 }
 0x575   :  { %v1974_v32 = vpack.c.b16 %v1959_v57, %v1958_v46 }
 0x577   :  { %2437 = vmatmul.bf16.vlgmr.msrb.gmra.mxu0 %v1974_v32 }
 0x578   :  { %v1699_v4 = vpop.f32.mrf.mxu3 }
 0x579   :  { %v1784_v40 = vpack.c.bf16 %v1699_v4, %v1699_v4 }
 0x57a   :  { %v2389_v57 = vpop.f32.mrf.mxu2 }
 0x57b   :  { %v1960_v13 = vunpack.c.l.b16 %v1784_v40 }
 0x580   :  { %v1701_v29 = vpop.f32.mrf.mxu3 }
 0x581   :  { %v1785_v48 = vpack.c.bf16 %v1701_v29, %v1701_v29 }
 0x583   :  { %v1961_v6 = vunpack.c.l.b16 %v1785_v48  ;;  %v2342_v48 = vpop.f32.mrf.mxu1 }
 0x585   :  { %v1975_v14 = vpack.c.b16 %v1961_v6, %v1960_v13  ;;  %v2391_v13 = vpop.f32.mrf.mxu2 }
 0x587   :  { %2442 = vmatmul.bf16.gmra.mxu0 %v1975_v14 }
 0x588   :  { %v1704_v42 = vpop.f32.mrf.mxu3 }
 0x589   :  { %v1786_v44 = vpack.c.bf16 %v1704_v42, %v1704_v42 }
 0x58b   :  { %v1962_v12 = vunpack.c.l.b16 %v1786_v44 }
 0x590   :  { %v1706_v17 = vpop.f32.mrf.mxu3 }
 0x591   :  { %v1787_v49 = vpack.c.bf16 %v1706_v17, %v1706_v17 }
 0x593   :  { %v1963_v59 = vunpack.c.l.b16 %v1787_v49  ;;  %v2345_v49 = vpop.f32.mrf.mxu1 }
 0x595   :  { %v1976_v61 = vpack.c.b16 %v1963_v59, %v1962_v12  ;;  %v2394_v59 = vpop.f32.mrf.mxu2 }
 0x597   :  { %2447 = vmatmul.bf16.gmra.mxu0 %v1976_v61 }
 0x598   :  { %v1709_v20 = vpop.f32.mrf.mxu3 }
 0x599   :  { %v1788_v23 = vpack.c.bf16 %v1709_v20, %v1709_v20 }
 0x59b   :  { %v1964_v26 = vunpack.c.l.b16 %v1788_v23  ;;  %v2347_v61 = vpop.f32.mrf.mxu1  ;;  %v2341_v23 = vadd.f32 %v2340_v53, %v3736_v7 }
 0x59d   :  { %v2396_v20 = vpop.f32.mrf.mxu2 }
 0x5a0   :  { %v1711_v27 = vpop.f32.mrf.mxu3 }
 0x5a1   :  { %v1789_v22 = vpack.c.bf16 %v1711_v27, %v1711_v27  ;;  %v2390_v27 = vadd.f32 %v2389_v57, %v2341_v23 }
 0x5a3   :  { %v1965_v28 = vunpack.c.l.b16 %v1789_v22 }
 0x5a5   :  { %v1977_v30 = vpack.c.b16 %v1965_v28, %v1964_v26  ;;  %v2245_v26 = vadd.f32 %v3731_v19, %v3726_v50 }
 0x5a7   :  { %2452 = vmatmul.bf16.gmra.mxu0 %v1977_v30  ;;  %v2294_v30 = vadd.f32 %v3738_v58, %v2245_v26  ;;  %v2250_v58 = vadd.f32 %v3731_v19, %v3733_v5 }
 0x5a8   :  { %v1714_v60 = vpop.f32.mrf.mxu3 }
 0x5a9   :  { %v1790_v1 = vpack.c.bf16 %v1714_v60, %v1714_v60 }
 0x5ab   :  { %v1966_v9 = vunpack.c.l.b16 %v1790_v1  ;;  %v2350_v1 = vpop.f32.mrf.mxu1 }
 0x5b0   :  { %v1716_v35 = vpop.f32.mrf.mxu3 }
 0x5b1   :  { %v1791_v31 = vpack.c.bf16 %v1716_v35, %v1716_v35  ;;  %v2343_v35 = vadd.f32 %v2342_v48, %v2294_v30 }
 0x5b3   :  { %v1967_v3 = vunpack.c.l.b16 %v1791_v31  ;;  %v2399_v31 = vpop.f32.mrf.mxu2 }
 0x5b5   :  { %v1978_v24 = vpack.c.b16 %v1967_v3, %v1966_v9  ;;  %v2392_v9 = vadd.f32 %v2391_v13, %v2343_v35 }
 0x5b7   :  { %2457 = vmatmul.bf16.gmra.mxu0 %v1978_v24 }
 0x5b8   :  { %v1719_v43 = vpop.f32.mrf.mxu3 }
 0x5b9   :  { %v1792_v33 = vpack.c.bf16 %v1719_v43, %v1719_v43 }
 0x5bb   :  { %v1968_v47 = vunpack.c.l.b16 %v1792_v33  ;;  %v2346_v33 = vadd.f32 %v2345_v49, %v3741_v37 }
 0x5c0   :  { %v1721_v2 = vpop.f32.mrf.mxu3 }
 0x5c1   :  { %v1793_v34 = vpack.c.bf16 %v1721_v2, %v1721_v2  ;;  %v2352_v2 = vpop.f32.mrf.mxu1 }
 0x5c3   :  { %v1969_v25 = vunpack.c.l.b16 %v1793_v34  ;;  %v2395_v34 = vadd.f32 %v2394_v59, %v2346_v33 }
 0x5c5   :  { %v1979_v39 = vpack.c.b16 %v1969_v25, %v1968_v47  ;;  %v2401_v47 = vpop.f32.mrf.mxu2 }
 0x5c7   :  { %2462 = vmatmul.bf16.gmra.mxu0 %v1979_v39  ;;  %v2299_v39 = vadd.f32 %v3745_v45, %v2250_v58  ;;  %v2255_v45 = vadd.f32 %v3731_v19, %v3743_v63 }
 0x5c8   :  { %v1724_v36 = vpop.f32.mrf.mxu3 }
 0x5c9   :  { %v1794_v52 = vpack.c.bf16 %v1724_v36, %v1724_v36  ;;  %v2355_v57 = vpop.f32.mrf.mxu1 }
 0x5ca   :  { %v2356_v26 = vadd.f32 %v2355_v57, %v3755_v8 }
 0x5cb   :  { %v1970_v32 = vunpack.c.l.b16 %v1794_v52  ;;  %v2348_v52 = vadd.f32 %v2347_v61, %v2299_v39 }
 0x5d0   :  { %v1726_v21 = vpop.f32.mrf.mxu3 }
 0x5d1   :  { %v1795_v46 = vpack.c.bf16 %v1726_v21, %v1726_v21  ;;  %v2397_v21 = vadd.f32 %v2396_v20, %v2348_v52 }
 0x5d3   :  { %v1971_v4 = vunpack.c.l.b16 %v1795_v46 }
 0x5d5   :  { %v1980_v40 = vpack.c.b16 %v1971_v4, %v1970_v32  ;;  %v2404_v4 = vpop.f32.mrf.mxu2 }
 0x5d6   :  { %v2405_v63 = vadd.f32 %v2404_v4, %v2356_v26 }
 0x5d7   :  { %2467 = vmatmul.bf16.gmra.mxu0 %v1980_v40 }
 0x5d8   :  { %v1729_v29 = vpop.f32.mrf.mxu3 }
 0x5d9   :  { %v1796_v6 = vpack.c.bf16 %v1729_v29, %v1729_v29  ;;  %v2351_v29 = vadd.f32 %v2350_v1, %v3748_v11 }
 0x5db   :  { %v1972_v44 = vunpack.c.l.b16 %v1796_v6  ;;  %v2400_v13 = vadd.f32 %v2399_v31, %v2351_v29 }
 0x5dd   :  { %v2406_v49 = vpop.f32.mrf.mxu2 }
 0x5e0   :  { %v1731_v14 = vpop.f32.mrf.mxu3 }
 0x5e1   :  { %v1797_v42 = vpack.c.bf16 %v1731_v14, %v1731_v14 }
 0x5e3   :  { %v1973_v17 = vunpack.c.l.b16 %v1797_v42  ;;  %v2357_v42 = vpop.f32.mrf.mxu1 }
 0x5e5   :  { %v1981_v12 = vpack.c.b16 %v1973_v17, %v1972_v44  ;;  %v2304_v44 = vadd.f32 %v3752_v56, %v2255_v45  ;;  %v2260_v56 = vadd.f32 %v3731_v19, %v3750_v51 }
 0x5e7   :  { %2472 = vmatmul.bf16.gmra.mxu0 %v1981_v12  ;;  %v2353_v12 = vadd.f32 %v2352_v2, %v2304_v44  ;;  %v2309_v35 = vadd.f32 %v3757_v62, %v2260_v56 }
 0x5e9   :  { %v2402_v61 = vadd.f32 %v2401_v47, %v2353_v12 }
 0x5f4   :  { %v2438_v22 = vpop.f32.mrf.mxu0 }
 0x5f5   :  { %v2439_v28 = vadd.f32 %v2438_v22, %v2390_v27  ;;  %v2360_v22 = vpop.f32.mrf.mxu1 }
 0x5f7   :  { %v2478_v60 = vmax.f32 %v2439_v28, 0.0  ;;  %v2409_v28 = vpop.f32.mrf.mxu2 }
 0x5f9   :  { %2494 = vst [vmem:[#allocation10] sm:$0xff] %v2478_v60 }
 0x5fc   :  { %v2440_v3 = vpop.f32.mrf.mxu0 }
 0x5fd   :  { %v2441_v24 = vadd.f32 %v2440_v3, %v2392_v9  ;;  %v2358_v9 = vadd.f32 %v2357_v42, %v2309_v35 }
 0x5ff   :  { %v2479_v43 = vmax.f32 %v2441_v24, 0.0  ;;  %v2407_v33 = vadd.f32 %v2406_v49, %v2358_v9  ;;  %v2411_v8 = vpop.f32.mrf.mxu2 }
 0x601   :  { %2495 = vst [vmem:[#allocation10 + $0x8] sm:$0xff] %v2479_v43  ;;  %v2591_v7 = vadd.f32 %v2479_v43, %v2478_v60  ;;  %v2362_v43 = vpop.f32.mrf.mxu1 }
 0x604   :  { %v2443_v50 = vpop.f32.mrf.mxu0 }
 0x605   :  { %v2444_v25 = vadd.f32 %v2443_v50, %v2395_v34  ;;  %v2361_v50 = vadd.f32 %v2360_v22, %v3760_v15 }
 0x607   :  { %v2480_v36 = vmax.f32 %v2444_v25, 0.0  ;;  %v2410_v51 = vadd.f32 %v2409_v28, %v2361_v50 }
 0x609   :  { %2496 = vst [vmem:[#allocation10 + $0x10] sm:$0xff] %v2480_v36  ;;  %v2577_v53 = vmul.f32 0.0, %v2480_v36  ;;  %v2365_v58 = vpop.f32.mrf.mxu1  ;;  %v2414_v36 = vpop.f32.mrf.mxu2 }
 0x60b   :  { %v2592_v46 = vadd.f32 %v2591_v7, %v2577_v53  ;;  %v2363_v53 = vadd.f32 %v2362_v43, %v3763_v16 }
 0x60c   :  { %v2445_v37 = vpop.f32.mrf.mxu0 }
 0x60d   :  { %v2446_v32 = vadd.f32 %v2445_v37, %v2397_v21  ;;  %v2412_v57 = vadd.f32 %v2411_v8, %v2363_v53 }
 0x60f   :  { %v2481_v40 = vmax.f32 %v2446_v32, 0.0 }
 0x611   :  { %2497 = vst [vmem:[#allocation10 + $0x18] sm:$0xff] %v2481_v40  ;;  %v2578_v48 = vmul.f32 0.0, %v2481_v40  ;;  %v2367_v40 = vpop.f32.mrf.mxu1  ;;  %v2416_v15 = vpop.f32.mrf.mxu2 }
 0x612   :  { %v2368_v44 = vadd.f32 %v2367_v40, %v3769_v54 }
 0x613   :  { %v2593_v5 = vadd.f32 %v2592_v46, %v2578_v48  ;;  %v2366_v48 = vadd.f32 %v2365_v58, %v3766_v41 }
 0x614   :  { %v2448_v6 = vpop.f32.mrf.mxu0  ;;  %v2417_v12 = vadd.f32 %v2416_v15, %v2368_v44 }
 0x615   :  { %v2449_v14 = vadd.f32 %v2448_v6, %v2400_v13 }
 0x617   :  { %v2482_v17 = vmax.f32 %v2449_v14, 0.0 }
 0x619   :  { %2498 = vst [vmem:[#allocation10 + $0x20] sm:$0xff] %v2482_v17  ;;  %v2579_v59 = vmul.f32 0.0, %v2482_v17  ;;  %v2370_v16 = vpop.f32.mrf.mxu1  ;;  %v2419_v49 = vpop.f32.mrf.mxu2 }
 0x61a   :  { %v2371_v41 = vadd.f32 %v2370_v16, %v3772_v55 }
 0x61b   :  { %v2594_v20 = vadd.f32 %v2593_v5, %v2579_v59  ;;  %v2415_v5 = vadd.f32 %v2414_v36, %v2366_v48 }
 0x61c   :  { %v2450_v11 = vpop.f32.mrf.mxu0  ;;  %v2420_v22 = vadd.f32 %v2419_v49, %v2371_v41 }
 0x61d   :  { %v2451_v23 = vadd.f32 %v2450_v11, %v2402_v61 }
 0x61f   :  { %v2483_v27 = vmax.f32 %v2451_v23, 0.0 }
 0x621   :  { %2499 = vst [vmem:[#allocation10 + $0x28] sm:$0xff] %v2483_v27  ;;  %v2580_v60 = vmul.f32 0.0, %v2483_v27  ;;  %v2372_v27 = vpop.f32.mrf.mxu1  ;;  %v2421_v28 = vpop.f32.mrf.mxu2 }
 0x622   :  { %v2373_v54 = vadd.f32 %v2372_v27, %v3775_v38 }
 0x623   :  { %v2595_v3 = vadd.f32 %v2594_v20, %v2580_v60 }
 0x624   :  { %v2453_v30 = vpop.f32.mrf.mxu0 }
 0x625   :  { %v2454_v1 = vadd.f32 %v2453_v30, %v2405_v63 }
 0x627   :  { %v2484_v31 = vmax.f32 %v2454_v1, 0.0  ;;  %v2422_v1 = vadd.f32 %v2421_v28, %v2373_v54 }
 0x629   :  { %2500 = vst [vmem:[#allocation10 + $0x30] sm:$0xff] %v2484_v31  ;;  %v2581_v24 = vmul.f32 0.0, %v2484_v31  ;;  %v2375_v31 = vpop.f32.mrf.mxu1 }
 0x62a   :  { %v2376_v43 = vadd.f32 %v2375_v31, %v3778_v10 }
 0x62b   :  { %v2596_v7 = vadd.f32 %v2595_v3, %v2581_v24  ;;  %v2424_v24 = vpop.f32.mrf.mxu2 }
 0x62c   :  { %v2455_v2 = vpop.f32.mrf.mxu0 }
 0x62d   :  { %v2456_v34 = vadd.f32 %v2455_v2, %v2407_v33 }
 0x62f   :  { %v2485_v47 = vmax.f32 %v2456_v34, 0.0  ;;  %v2280_v34 = vadd.f32 %v3731_v19, %v3780_v0 }
 0x631   :  { %2501 = vst [vmem:[#allocation10 + $0x38] sm:$0xff] %v2485_v47  ;;  %v2582_v39 = vmul.f32 0.0, %v2485_v47  ;;  %v2377_v47 = vpop.f32.mrf.mxu1  ;;  %v2329_v50 = vadd.f32 %v3782_v18, %v2280_v34 }
 0x633   :  { %v2597_v21 = vadd.f32 %v2596_v7, %v2582_v39  ;;  %v2425_v7 = vadd.f32 %v2424_v24, %v2376_v43  ;;  %v2426_v58 = vpop.f32.mrf.mxu2 }
 0x634   :  { %v2458_v25 = vpop.f32.mrf.mxu0 }
 0x635   :  { %v2459_v62 = vadd.f32 %v2458_v25, %v2410_v51  ;;  %v2378_v25 = vadd.f32 %v2377_v47, %v2329_v50 }
 0x637   :  { %v2486_v52 = vmax.f32 %v2459_v62, 0.0  ;;  %v2427_v62 = vadd.f32 %v2426_v58, %v2378_v25 }
 0x639   :  { %2502 = vst [vmem:[#allocation10 + $0x40] sm:$0xff] %v2486_v52  ;;  %v2583_v46 = vmul.f32 0.0, %v2486_v52 }
 0x63b   :  { %v2598_v37 = vadd.f32 %v2597_v21, %v2583_v46 }
 0x63c   :  { %v2460_v32 = vpop.f32.mrf.mxu0 }
 0x63d   :  { %v2461_v4 = vadd.f32 %v2460_v32, %v2412_v57 }
 0x63f   :  { %v2487_v29 = vmax.f32 %v2461_v4, 0.0 }
 0x641   :  { %2503 = vst [vmem:[#allocation10 + $0x48] sm:$0xff] %v2487_v29  ;;  %v2584_v13 = vmul.f32 0.0, %v2487_v29 }
 0x643   :  { %v2599_v6 = vadd.f32 %v2598_v37, %v2584_v13 }
 0x644   :  { %v2463_v45 = vpop.f32.mrf.mxu0 }
 0x645   :  { %v2464_v14 = vadd.f32 %v2463_v45, %v2415_v5 }
 0x647   :  { %v2488_v42 = vmax.f32 %v2464_v14, 0.0 }
 0x649   :  { %2504 = vst [vmem:[#allocation10 + $0x50] sm:$0xff] %v2488_v42  ;;  %v2585_v17 = vmul.f32 0.0, %v2488_v42 }
 0x64b   :  { %v2600_v59 = vadd.f32 %v2599_v6, %v2585_v17 }
 0x64c   :  { %v2465_v61 = vpop.f32.mrf.mxu0 }
 0x64d   :  { %v2466_v20 = vadd.f32 %v2465_v61, %v2417_v12 }
 0x64f   :  { %v2489_v11 = vmax.f32 %v2466_v20, 0.0 }
 0x651   :  { %2505 = vst [vmem:[#allocation10 + $0x58] sm:$0xff] %v2489_v11  ;;  %v2586_v23 = vmul.f32 0.0, %v2489_v11 }
 0x653   :  { %v2601_v26 = vadd.f32 %v2600_v59, %v2586_v23 }
 0x654   :  { %v2468_v63 = vpop.f32.mrf.mxu0 }
 0x655   :  { %v2469_v30 = vadd.f32 %v2468_v63, %v2420_v22 }
 0x657   :  { %v2490_v56 = vmax.f32 %v2469_v30, 0.0 }
 0x659   :  { %2506 = vst [vmem:[#allocation10 + $0x60] sm:$0xff] %v2490_v56  ;;  %v2587_v60 = vmul.f32 0.0, %v2490_v56 }
 0x65b   :  { %v2602_v35 = vadd.f32 %v2601_v26, %v2587_v60 }
 0x65c   :  { %v2470_v9 = vpop.f32.mrf.mxu0 }
 0x65d   :  { %v2471_v3 = vadd.f32 %v2470_v9, %v2422_v1 }
 0x65f   :  { %v2491_v55 = vmax.f32 %v2471_v3, 0.0 }
 0x661   :  { %2507 = vst [vmem:[#allocation10 + $0x68] sm:$0xff] %v2491_v55  ;;  %v2588_v33 = vmul.f32 0.0, %v2491_v55 }
 0x663   :  { %v2603_v8 = vadd.f32 %v2602_v35, %v2588_v33 }
 0x664   :  { %v2473_v2 = vpop.f32.mrf.mxu0 }
 0x665   :  { %v2474_v38 = vadd.f32 %v2473_v2, %v2425_v7 }
 0x667   :  { %v2492_v51 = vmax.f32 %v2474_v38, 0.0 }
 0x669   :  { %2508 = vst [vmem:[#allocation10 + $0x70] sm:$0xff] %v2492_v51  ;;  %v2589_v39 = vmul.f32 0.0, %v2492_v51 }
 0x66b   :  { %v2604_v36 = vadd.f32 %v2603_v8, %v2589_v39 }
 0x66c   :  { %v2475_v10 = vpop.f32.mrf.mxu0 }
 0x66d   :  { %v2476_v52 = vadd.f32 %v2475_v10, %v2427_v62 }
 0x66f   :  { %v2493_v19 = vmax.f32 %v2476_v52, 0.0 }
 0x671   :  { %2509 = vst [vmem:[#allocation10 + $0x78] sm:$0xff] %v2493_v19  ;;  %v2590_v0 = vmul.f32 0.0, %v2493_v19 }
 0x672   :  { %2625 = dma.vmem_to_hbm [thread:$0]  %s2618_s22, 2048, %s2620_s25, [#allocation4], %s3471_s26, %s3471_s26, %s3472_s27  }
 0x673   :  { %v2605_v18 = vadd.f32 %v2604_v36, %v2590_v0 }
 0x675   :  { %v2606_v53 = vrot.slane %v2605_v18, 4 }
 0x677   :  { %v2607_v21 = vadd.f32 %v2606_v53, %v2605_v18 }
 0x679   :  { %v2608_v46 = vrot.slane %v2607_v21, 2 }
 0x67b   :  { %v2609_v57 = vadd.f32 %v2608_v46, %v2607_v21 }
 0x67d   :  { %v2610_v37 = vrot.slane %v2609_v57, 1 }
 0x67f   :  { %v2611_v32 = vadd.f32 %v2610_v37, %v2609_v57 }
 0x681   :  { %2612 = vst [vmem:[#allocation11] sm:$0x1] %v2611_v32 }
 0x682   :  { %2636 = dma.vmem_to_hbm [thread:$0]  %s2632_s29, 16, %s2634_s6, [#allocation12]  }
 0x683   :  { %3460 = dma.done.wait [#allocation4], 2048  }
 0x684   :  { %3461 = vsyncadd [#allocation4], 4294965248 }
 0x685   :  { %3462 = dma.done.wait [#allocation12], 16  }
 0x686   :  { %3463 = vsyncadd [#allocation12], 4294967280 }
 0x687   :  { %2645 = vsyncpa [#allocation3], 1 }
 0x688   :  { %2646 = vsyncpa [#allocation6], 1 }
 0x689   :  { %2647 = vsyncpa [#allocation9], 1 }
 0x68a   :  { %2648 = vsyncpa [#allocation4], 1 }
 0x68b   :  { %2649 = vsyncpa [#allocation12], 1 }

</bundles_post_ra>
